<compile_context>
chip_gen: v5e
topology: v5e:2x2
jax: 0.10.0
libtpu: 0.0.40
codegen_flags: <defaults>
</compile_context>

<pallas_src>
import functools

import jax
import jax.numpy as jnp
from jax.experimental import pallas as pl
from jax.experimental.pallas import tpu as pltpu


# ----------------------------------------------------------------------------
# Pallas kernel: FDM attention body (per batch element, per query tile)
# ----------------------------------------------------------------------------
def _fdm_kernel(xq_ref, p_ref, gext_ref, gate_q_ref, wpos_ref, wneg_ref,
                wt_ref, wz_ref, wz2_ref, bias_ref, out_ref, *,
                cp_pad, exp_dtype):
    # xq_ref    : (1, Cin, TQ)     f32  channel-first query tile of x
    # p_ref     : (1, Cp_pad, HW)  bf16 key projection (hoisted to wrapper)
    # gext_ref  : (1, Cg, HW)      bf16 [g ; ones ; 0-pad] key projection
    # gate_q_ref: (1, 1, TQ)       f32  sigmoid gate over the query pixels
    # wpos_ref  : (1, 1, HW)       f32  positive key weights (click ch 0)
    # wneg_ref  : (1, 1, HW)       f32  negative key weights
    # wt_ref    : (Cp_pad, Cin)    bf16 t projection (channel-first, 0-padded)
    # wz_ref    : (Cp_pad, Cin)    bf16 z  with bn1 scale folded in
    # wz2_ref   : (Cp_pad, Cin)    bf16 z2 with bn2 scale folded in
    # bias_ref  : (Cin, 1)         f32  bn1_shift + bn2_shift
    # out_ref   : (1, Cin, TQ)     f32  channel-first output tile
    xq = xq_ref[0]                           # (Cin, TQ) f32 (kept for residual)
    p = p_ref[0]                             # (Cp_pad, HW) bf16
    g_ext = gext_ref[0]                      # (Cg, HW) bf16

    # t projection: bf16 x bf16 -> f32 accumulation on the MXU.
    t = jnp.dot(wt_ref[...], xq.astype(jnp.bfloat16),
                preferred_element_type=jnp.float32)            # (Cp_pad, TQ)

    # att[i, j] = t[:, i] . p[:, j]      (torch: bmm(t^T, p))
    att = jax.lax.dot_general(
        t.astype(jnp.bfloat16), p,
        (((0,), (0,)), ((), ())),
        preferred_element_type=jnp.float32)                    # (TQ, HW) f32

    gate_q = gate_q_ref[0]                   # (1, TQ)
    w_pos = wpos_ref[0]                      # (1, HW)
    w_neg = wneg_ref[0]                      # (1, HW)

    def branch(w_row, gate_row):
        aw = att * w_row                                       # (TQ, HW) f32
        m = jnp.max(aw, axis=-1, keepdims=True)                # (TQ, 1)  f32
        # exp in bf16 on v6e/v7x (bf16 EUP), f32 on v5e; the astype to bf16
        # afterwards is a no-op when exp already ran in bf16.
        e = jnp.exp((aw - m).astype(exp_dtype)).astype(jnp.bfloat16)
        # xg_ext[c, i] = sum_j g_ext[c, j] * e[i, j]; row cp_pad is sum_j e[i,j]
        # (the softmax denominator, produced by the same matmul).
        xg_ext = jax.lax.dot_general(
            g_ext, e, (((1,), (1,)), ((), ())),
            preferred_element_type=jnp.float32)                # (Cg, TQ) f32
        denom = xg_ext[cp_pad:cp_pad + 1, :]                   # (1, TQ) aligned
        scale = gate_row * pl.reciprocal(denom, approx=False)  # (1, TQ)
        return (xg_ext[0:cp_pad, :] * scale).astype(jnp.bfloat16)  # (Cp_pad, TQ)

    xg_pos = branch(w_pos, gate_q)
    xg_neg = branch(w_neg, 1.0 - gate_q)

    # Tail: two accumulated bf16 matmuls (BN scales already folded into the
    # weights), then shift + residual in f32.
    tail = jax.lax.dot_general(
        wz_ref[...], xg_pos, (((0,), (0,)), ((), ())),
        preferred_element_type=jnp.float32)                    # (Cin, TQ)
    tail = tail + jax.lax.dot_general(
        wz2_ref[...], xg_neg, (((0,), (0,)), ((), ())),
        preferred_element_type=jnp.float32)

    out_ref[0] = (tail + bias_ref[...] + xq).astype(out_ref.dtype)


# ----------------------------------------------------------------------------
# Wrapper helpers
# ----------------------------------------------------------------------------
def _round_up(x, m):
    return (x + m - 1) // m * m


def _bn_affine(gamma, beta, mean, var, eps=1e-5):
    scale = gamma / jnp.sqrt(var + eps)
    shift = beta - mean * scale
    return scale, shift


def _vmem_capacity_bytes():
    try:
        return int(pltpu.get_tpu_info().vmem_capacity_bytes)
    except Exception:
        pass
    try:
        kind = jax.devices()[0].device_kind.lower()
        if "v7" in kind:
            return 64 * 1024 * 1024
        return 128 * 1024 * 1024
    except Exception:
        return 64 * 1024 * 1024


def _exp_dtype():
    # bf16 exp roughly doubles EUP throughput on v6e/v7x; older chips (v5e and
    # earlier) have no bf16 EUP/VPU, so keep element-wise math f32 there.
    try:
        kind = jax.devices()[0].device_kind.lower()
    except Exception:
        return jnp.float32
    if "v6" in kind or "v7" in kind:
        return jnp.bfloat16
    return jnp.float32


def _vmem_bytes_estimate(tq, hw, cin, cp_pad, cg, exp_bytes):
    f32, bf16 = 4, 2
    interm = tq * hw * (f32 + f32 + exp_bytes + bf16)       # att + aw + e (+ slack)
    io = 2 * (cin * tq * f32                                 # xq (double-buffered)
              + cp_pad * hw * bf16                           # p keys
              + cg * hw * bf16                               # g_ext keys
              + 3 * hw * f32                                 # w_pos / w_neg rows
              + tq * f32                                     # gate_q row
              + cin * tq * f32)                              # output tile
    small = (tq * (3 * cp_pad + 2 * cg + cin) * f32
             + 3 * cp_pad * cin * bf16 + cin * f32)
    return interm + io + small + (2 << 20)                   # compiler scratch slack


def _pick_tq(hw, batch, cin, cp_pad, cg, exp_bytes, cap, tq=None):
    if tq is not None:
        if hw % tq != 0 or (tq != hw and tq % 128 != 0):
            raise ValueError(f"invalid query tile {tq} for HW={hw}")
        return tq
    budget = int(0.6 * max(cap - (8 << 20), 24 << 20))
    est = lambda c: _vmem_bytes_estimate(c, hw, cin, cp_pad, cg, exp_bytes)
    cands = [hw] + [c for c in (1024, 512, 384, 256, 128)
                    if c < hw and hw % c == 0]
    chosen = None
    for c in cands:
        if est(c) <= budget:
            chosen = c
            break
    if chosen is None:
        # TODO(synk): HW this large needs an online-softmax key-tile loop;
        # fall back to the smallest available query tile.
        chosen = cands[-1]
    # Keep both v7x TensorCores busy: guarantee >= 2 grid steps when B == 1.
    if batch == 1 and chosen == hw and hw % 256 == 0:
        chosen = hw // 2
    return chosen


# ----------------------------------------------------------------------------
# Forward wrapper
# ----------------------------------------------------------------------------
def fdm_v2_forward(x_nchw, click_maps, params, *, tq=None):
    B, Cin, H, W = x_nchw.shape
    Cp = params["wt"].shape[1]
    HW = H * W
    Cp_pad = _round_up(max(Cp, 8), 8)
    Cg = Cp_pad + 8                       # Cp_pad g rows + ones row + zero pad

    exp_dtype = _exp_dtype()
    exp_bytes = jnp.dtype(exp_dtype).itemsize
    cap = _vmem_capacity_bytes()
    TQ = _pick_tq(HW, B, Cin, Cp_pad, Cg, exp_bytes, cap, tq=tq)
    NQ = HW // TQ

    x = x_nchw.astype(jnp.float32)
    x_cf = x.reshape(B, Cin, HW)          # channel-first flattening: no transpose
    x_bf = x_cf.astype(jnp.bfloat16)

    # --- gate head: depthwise 3x3 * pointwise 1x1 folds into one 3x3 conv ---
    dw_eff = params["dw"] * params["pw"].reshape(1, 1, Cin)        # (3,3,Cin)
    w_conv = jnp.transpose(dw_eff, (2, 0, 1))[None]                # (1,Cin,3,3)
    gate_logit = jax.lax.conv_general_dilated(
        x, w_conv, (1, 1), "SAME",
        dimension_numbers=("NCHW", "OIHW", "NCHW"),
        precision=jax.lax.Precision.HIGHEST)                       # (B,1,H,W)
    gate_map_pos_ori = jax.nn.sigmoid(gate_logit)
    gate_map_neg_ori = 1.0 - gate_map_pos_ori

    gate_row = gate_map_pos_ori.reshape(B, 1, HW)
    w_pos_row = click_maps[:, 0].reshape(B, 1, HW).astype(jnp.float32)
    w_neg_row = (click_maps[:, 1].reshape(B, 1, HW).astype(jnp.float32) * 0.5
                 + (1.0 - gate_row) * 0.5)

    # --- weights: channel-first, bf16, zero-padded to sublane multiples ------
    def pad_rows(w_cf, rows):                                      # (r,Cin)->(rows,Cin)
        return jnp.pad(w_cf, ((0, rows - w_cf.shape[0]), (0, 0)))

    wt_p = pad_rows(params["wt"].T, Cp_pad).astype(jnp.bfloat16)
    wp_p = pad_rows(params["wp"].T, Cp_pad).astype(jnp.bfloat16)
    wg_p = pad_rows(params["wg"].T, Cp_pad).astype(jnp.bfloat16)

    bn1_scale, bn1_shift = _bn_affine(params["bn1_gamma"], params["bn1_beta"],
                                      params["bn1_mean"], params["bn1_var"])
    bn2_scale, bn2_shift = _bn_affine(params["bn2_gamma"], params["bn2_beta"],
                                      params["bn2_mean"], params["bn2_var"])
    wz_eff = pad_rows(params["wz"] * bn1_scale[None, :], Cp_pad).astype(jnp.bfloat16)
    wz2_eff = pad_rows(params["wz2"] * bn2_scale[None, :], Cp_pad).astype(jnp.bfloat16)
    bias = (bn1_shift + bn2_shift).reshape(Cin, 1).astype(jnp.float32)

    # --- key-side projections hoisted out of the kernel (once per batch) -----
    p_keys = jnp.einsum("oc,bci->boi", wp_p, x_bf,
                        preferred_element_type=jnp.float32).astype(jnp.bfloat16)
    g_keys = jnp.einsum("oc,bci->boi", wg_p, x_bf,
                        preferred_element_type=jnp.float32).astype(jnp.bfloat16)
    g_ext = jnp.concatenate(
        [g_keys,
         jnp.ones((B, 1, HW), jnp.bfloat16),          # softmax-denominator row
         jnp.zeros((B, Cg - Cp_pad - 1, HW), jnp.bfloat16)], axis=1)   # (B,Cg,HW)

    # --- VMEM budget & cost estimate -----------------------------------------
    est = _vmem_bytes_estimate(TQ, HW, Cin, Cp_pad, Cg, exp_bytes)
    vmem_limit = int(min(max(2 * est, 32 << 20), max(cap - (8 << 20), 32 << 20)))

    flops = int(2 * B * HW * HW * (Cp_pad + 2 * Cg)
                + 2 * B * HW * Cin * 3 * Cp_pad)
    cost = pl.CostEstimate(
        flops=flops,
        transcendentals=int(2 * B * HW * HW),
        bytes_accessed=int(4 * 2 * B * Cin * HW
                           + 2 * B * (Cp_pad + Cg) * HW
                           + 4 * 3 * B * HW
                           + 2 * 3 * Cp_pad * Cin + 4 * Cin))

    grid_spec = pltpu.PrefetchScalarGridSpec(
        num_scalar_prefetch=0,
        grid=(B, NQ),
        in_specs=[
            pl.BlockSpec((1, Cin, TQ), lambda b, q: (b, 0, q)),      # x query tile
            pl.BlockSpec((1, Cp_pad, HW), lambda b, q: (b, 0, 0)),   # p keys (bf16)
            pl.BlockSpec((1, Cg, HW), lambda b, q: (b, 0, 0)),       # g_ext keys (bf16)
            pl.BlockSpec((1, 1, TQ), lambda b, q: (b, 0, q)),        # gate (query)
            pl.BlockSpec((1, 1, HW), lambda b, q: (b, 0, 0)),        # w_pos (keys)
            pl.BlockSpec((1, 1, HW), lambda b, q: (b, 0, 0)),        # w_neg (keys)
            pl.BlockSpec((Cp_pad, Cin), lambda b, q: (0, 0)),        # wt (bf16)
            pl.BlockSpec((Cp_pad, Cin), lambda b, q: (0, 0)),        # wz  (BN folded)
            pl.BlockSpec((Cp_pad, Cin), lambda b, q: (0, 0)),        # wz2 (BN folded)
            pl.BlockSpec((Cin, 1), lambda b, q: (0, 0)),             # bn shifts
        ],
        out_specs=pl.BlockSpec((1, Cin, TQ), lambda b, q: (b, 0, q)),
    )

    kernel = functools.partial(_fdm_kernel, cp_pad=Cp_pad, exp_dtype=exp_dtype)
    out_cf = pl.pallas_call(
        kernel,
        out_shape=jax.ShapeDtypeStruct((B, Cin, HW), jnp.float32),
        grid_spec=grid_spec,
        compiler_params=pltpu.CompilerParams(
            dimension_semantics=("parallel", "parallel"),
            vmem_limit_bytes=vmem_limit),
        cost_estimate=cost,
    )(x_cf, p_keys, g_ext, gate_row, w_pos_row, w_neg_row,
      wt_p, wz_eff, wz2_eff, bias)

    out_nchw = out_cf.reshape(B, Cin, H, W)      # free reshape, no transpose
    return out_nchw, gate_map_pos_ori, gate_map_neg_ori


# ----------------------------------------------------------------------------
# Pure-JAX reference (mirrors the PyTorch forward semantics)
# ----------------------------------------------------------------------------
def reference_forward(x_nchw, click_maps, params):
    hi = jax.lax.Precision.HIGHEST
    B, Cin, H, W = x_nchw.shape
    HW = H * W
    x_nhwc = jnp.transpose(x_nchw, (0, 2, 3, 1))

    xpad = jnp.pad(x_nhwc, ((0, 0), (1, 1), (1, 1), (0, 0)))
    acc = jnp.zeros_like(x_nhwc)
    for dy in range(3):
        for dx in range(3):
            acc = acc + xpad[:, dy:dy + H, dx:dx + W, :] * params["dw"][dy, dx]
    gate = jax.nn.sigmoid(jnp.sum(acc * params["pw"].reshape(1, 1, 1, Cin), -1))
    gate_pos = gate[:, None, :, :]
    gate_neg = 1.0 - gate_pos

    x_flat = x_nhwc.reshape(B, HW, Cin)
    t = jnp.einsum("bic,cd->bid", x_flat, params["wt"], precision=hi)
    p = jnp.einsum("bic,cd->bid", x_flat, params["wp"], precision=hi)
    g = jnp.einsum("bic,cd->bid", x_flat, params["wg"], precision=hi)
    att = jnp.einsum("bic,bjc->bij", t, p, precision=hi)            # (B,HW,HW)

    w_pos = click_maps[:, 0].reshape(B, 1, HW)
    w_neg = click_maps[:, 1].reshape(B, 1, HW) * 0.5 + gate_neg.reshape(B, 1, HW) * 0.5

    bn1_scale, bn1_shift = _bn_affine(params["bn1_gamma"], params["bn1_beta"],
                                      params["bn1_mean"], params["bn1_var"])
    bn2_scale, bn2_shift = _bn_affine(params["bn2_gamma"], params["bn2_beta"],
                                      params["bn2_mean"], params["bn2_var"])

    def branch(w_row, gate_q, wz, scale, shift):
        a = jax.nn.softmax(att * w_row, axis=-1)
        a = a * gate_q.reshape(B, HW, 1)
        xo = jnp.einsum("bij,bjc->bic", a, g, precision=hi)
        z = jnp.einsum("bic,cd->bid", xo, wz, precision=hi)
        return z * scale.reshape(1, 1, Cin) + shift.reshape(1, 1, Cin)

    out = (branch(w_pos, gate_pos, params["wz"], bn1_scale, bn1_shift)
           + x_flat
           + branch(w_neg, gate_neg, params["wz2"], bn2_scale, bn2_shift))
    out_nchw = jnp.transpose(out.reshape(B, H, W, Cin), (0, 3, 1, 2))
    return out_nchw, gate_pos, gate_neg


# ----------------------------------------------------------------------------
if __name__ == "__main__":
    B, Cin, Cp, H, W = 2, 4, 4, 16, 16     # inplanes=4, planes=4

    key = jax.random.PRNGKey(0)
    k = jax.random.split(key, 10)
    params = {
        # gate head (depthwise 3x3 + pointwise 1x1)
        "dw": 0.2 * jax.random.normal(k[0], (3, 3, Cin), jnp.float32),
        "pw": 0.3 * jax.random.normal(k[1], (Cin,), jnp.float32),
        # 1x1 conv weights, stored as (C_in, C_out) matrices
        "wt": 0.25 * jax.random.normal(k[2], (Cin, Cp), jnp.float32),
        "wp": 0.25 * jax.random.normal(k[3], (Cin, Cp), jnp.float32),
        "wg": 0.25 * jax.random.normal(k[4], (Cin, Cp), jnp.float32),
        "wz": 0.25 * jax.random.normal(k[5], (Cp, Cin), jnp.float32),
        "wz2": 0.25 * jax.random.normal(k[6], (Cp, Cin), jnp.float32),
        # deterministic batch-norm parameters (inference mode)
        "bn1_gamma": 1.0 + 0.10 * jnp.arange(Cin, dtype=jnp.float32),
        "bn1_beta": 0.05 * jnp.arange(Cin, dtype=jnp.float32),
        "bn1_mean": 0.02 * jnp.arange(Cin, dtype=jnp.float32),
        "bn1_var": 1.0 + 0.03 * jnp.arange(Cin, dtype=jnp.float32),
        "bn2_gamma": 1.0 - 0.05 * jnp.arange(Cin, dtype=jnp.float32),
        "bn2_beta": -0.03 * jnp.arange(Cin, dtype=jnp.float32),
        "bn2_mean": 0.01 * jnp.arange(Cin, dtype=jnp.float32),
        "bn2_var": 1.0 + 0.05 * jnp.arange(Cin, dtype=jnp.float32),
    }

    x = jax.random.normal(k[7], (B, Cin, H, W), jnp.float32)           # NCHW
    click_maps = jax.random.bernoulli(k[8], 0.05, (B, 2, H, W)).astype(jnp.float32)

    ref_out, ref_gp, ref_gn = reference_forward(x, click_maps, params)

    # Run both the auto-tiled default and an explicitly query-tiled variant
    # (TQ=128 -> 2 query tiles) to exercise the tiling path.
    for tq in (None, 128):
        out, gate_pos, gate_neg = fdm_v2_forward(x, click_maps, params, tq=tq)
        jax.block_until_ready((out, gate_pos, gate_neg))

        assert out.shape == (B, Cin, H, W)
        assert gate_pos.shape == (B, 1, H, W) and gate_neg.shape == (B, 1, H, W)
        assert jnp.allclose(gate_pos, ref_gp, atol=1e-4, rtol=1e-4)
        assert jnp.allclose(gate_neg, ref_gn, atol=1e-4, rtol=1e-4)
        assert jnp.allclose(out, ref_out, atol=2e-2, rtol=2e-2), (
            tq, float(jnp.max(jnp.abs(out - ref_out))))

    print("KERNEL_OK")
</pallas_src>

<mosaic_0001>
module attributes {stable_mosaic.version = 11 : i64} {
  func.func @_fdm_kernel(%arg0: i32, %arg1: i32, %arg2: memref<1x4x256xf32, #tpu.memory_space<vmem>>, %arg3: memref<1x8x256xbf16, #tpu.memory_space<vmem>>, %arg4: memref<1x16x256xbf16, #tpu.memory_space<vmem>>, %arg5: memref<1x1x256xf32, #tpu.memory_space<vmem>>, %arg6: memref<1x1x256xf32, #tpu.memory_space<vmem>>, %arg7: memref<1x1x256xf32, #tpu.memory_space<vmem>>, %arg8: memref<8x4xbf16, #tpu.memory_space<vmem>>, %arg9: memref<8x4xbf16, #tpu.memory_space<vmem>>, %arg10: memref<8x4xbf16, #tpu.memory_space<vmem>>, %arg11: memref<4x1xf32, #tpu.memory_space<vmem>>, %arg12: memref<1x4x256xf32, #tpu.memory_space<vmem>>) attributes {dimension_semantics = [#tpu.dimension_semantics<parallel>, #tpu.dimension_semantics<parallel>], iteration_bounds = array<i64: 2, 1>, scalar_prefetch = 0 : i64, scratch_operands = 0 : i64, tpu.core_type = #tpu.core_type<tc>, window_params = [{transform_indices = @transform_0, window_bounds = array<i64: 1, 4, 256>}, {transform_indices = @transform_1, window_bounds = array<i64: 1, 8, 256>}, {transform_indices = @transform_2, window_bounds = array<i64: 1, 16, 256>}, {transform_indices = @transform_3, window_bounds = array<i64: 1, 1, 256>}, {transform_indices = @transform_4, window_bounds = array<i64: 1, 1, 256>}, {transform_indices = @transform_5, window_bounds = array<i64: 1, 1, 256>}, {pipeline_mode = #tpu.pipeline_mode<synchronous>, transform_indices = @transform_6, window_bounds = array<i64: 8, 4>}, {pipeline_mode = #tpu.pipeline_mode<synchronous>, transform_indices = @transform_7, window_bounds = array<i64: 8, 4>}, {pipeline_mode = #tpu.pipeline_mode<synchronous>, transform_indices = @transform_8, window_bounds = array<i64: 8, 4>}, {pipeline_mode = #tpu.pipeline_mode<synchronous>, transform_indices = @transform_9, window_bounds = array<i64: 4, 1>}, {transform_indices = @transform_10, window_bounds = array<i64: 1, 4, 256>}]} {
    %c0 = arith.constant 0 : index
    %c0_0 = arith.constant 0 : index
    %c0_1 = arith.constant 0 : index
    %0 = vector.load %arg2[%c0, %c0_0, %c0_1] : memref<1x4x256xf32, #tpu.memory_space<vmem>>, vector<1x4x256xf32>
    %1 = vector.shape_cast %0 : vector<1x4x256xf32> to vector<4x256xf32>
    %c0_2 = arith.constant 0 : index
    %c0_3 = arith.constant 0 : index
    %c0_4 = arith.constant 0 : index
    %2 = vector.load %arg3[%c0_2, %c0_3, %c0_4] : memref<1x8x256xbf16, #tpu.memory_space<vmem>>, vector<1x8x256xbf16>
    %3 = vector.shape_cast %2 : vector<1x8x256xbf16> to vector<8x256xbf16>
    %c0_5 = arith.constant 0 : index
    %c0_6 = arith.constant 0 : index
    %c0_7 = arith.constant 0 : index
    %4 = vector.load %arg4[%c0_5, %c0_6, %c0_7] : memref<1x16x256xbf16, #tpu.memory_space<vmem>>, vector<1x16x256xbf16>
    %5 = vector.shape_cast %4 : vector<1x16x256xbf16> to vector<16x256xbf16>
    %c0_8 = arith.constant 0 : index
    %c0_9 = arith.constant 0 : index
    %6 = vector.load %arg8[%c0_8, %c0_9] : memref<8x4xbf16, #tpu.memory_space<vmem>>, vector<8x4xbf16>
    %7 = arith.truncf %1 : vector<4x256xf32> to vector<4x256xbf16>
    %cst = arith.constant dense<0.000000e+00> : vector<8x256xf32>
    %8 = tpu.matmul %6, %7, %cst {dimension_numbers = #tpu.dot_dimension_numbers<[1], [0], [0], [1], [0, 0, 1, 1], [], []>} : vector<8x4xbf16>, vector<4x256xbf16>, vector<8x256xf32> -> vector<8x256xf32>
    %9 = arith.truncf %8 : vector<8x256xf32> to vector<8x256xbf16>
    %cst_10 = arith.constant dense<0.000000e+00> : vector<256x256xf32>
    %10 = tpu.matmul %9, %3, %cst_10 {dimension_numbers = #tpu.dot_dimension_numbers<[0], [0], [1], [1], [0, 1, 1, 1], [], []>} : vector<8x256xbf16>, vector<8x256xbf16>, vector<256x256xf32> -> vector<256x256xf32>
    %c0_11 = arith.constant 0 : index
    %c0_12 = arith.constant 0 : index
    %c0_13 = arith.constant 0 : index
    %11 = vector.load %arg5[%c0_11, %c0_12, %c0_13] : memref<1x1x256xf32, #tpu.memory_space<vmem>>, vector<1x1x256xf32>
    %12 = vector.shape_cast %11 : vector<1x1x256xf32> to vector<1x256xf32>
    %c0_14 = arith.constant 0 : index
    %c0_15 = arith.constant 0 : index
    %c0_16 = arith.constant 0 : index
    %13 = vector.load %arg6[%c0_14, %c0_15, %c0_16] : memref<1x1x256xf32, #tpu.memory_space<vmem>>, vector<1x1x256xf32>
    %14 = vector.shape_cast %13 : vector<1x1x256xf32> to vector<1x256xf32>
    %c0_17 = arith.constant 0 : index
    %c0_18 = arith.constant 0 : index
    %c0_19 = arith.constant 0 : index
    %15 = vector.load %arg7[%c0_17, %c0_18, %c0_19] : memref<1x1x256xf32, #tpu.memory_space<vmem>>, vector<1x1x256xf32>
    %16 = vector.shape_cast %15 : vector<1x1x256xf32> to vector<1x256xf32>
    %17 = vector.broadcast %14 : vector<1x256xf32> to vector<256x256xf32>
    %18 = arith.mulf %10, %17 : vector<256x256xf32>
    %cst_20 = arith.constant dense<0xFF800000> : vector<256xf32>
    %19 = vector.multi_reduction <maximumf>, %18, %cst_20 [1] : vector<256x256xf32> to vector<256xf32>
    %20 = vector.shape_cast %19 : vector<256xf32> to vector<256x1xf32>
    %21 = vector.broadcast %20 : vector<256x1xf32> to vector<256x256xf32>
    %22 = arith.subf %18, %21 : vector<256x256xf32>
    %23 = math.exp %22 : vector<256x256xf32>
    %24 = arith.truncf %23 : vector<256x256xf32> to vector<256x256xbf16>
    %cst_21 = arith.constant dense<0.000000e+00> : vector<16x256xf32>
    %25 = tpu.matmul %5, %24, %cst_21 {dimension_numbers = #tpu.dot_dimension_numbers<[1], [1], [0], [0], [0, 0, 1, 0], [], []>} : vector<16x256xbf16>, vector<256x256xbf16>, vector<16x256xf32> -> vector<16x256xf32>
    %26 = vector.extract_strided_slice %25 {offsets = [8, 0], sizes = [1, 256], strides = [1, 1]} : vector<16x256xf32> to vector<1x256xf32>
    %27 = tpu.reciprocal %26 : vector<1x256xf32> -> vector<1x256xf32>
    %28 = arith.mulf %12, %27 : vector<1x256xf32>
    %29 = vector.extract_strided_slice %25 {offsets = [0, 0], sizes = [8, 256], strides = [1, 1]} : vector<16x256xf32> to vector<8x256xf32>
    %30 = vector.broadcast %28 : vector<1x256xf32> to vector<8x256xf32>
    %31 = arith.mulf %29, %30 : vector<8x256xf32>
    %32 = arith.truncf %31 : vector<8x256xf32> to vector<8x256xbf16>
    %cst_22 = arith.constant 1.000000e+00 : f32
    %33 = vector.broadcast %cst_22 : f32 to vector<1x256xf32>
    %34 = arith.subf %33, %12 : vector<1x256xf32>
    %35 = vector.broadcast %16 : vector<1x256xf32> to vector<256x256xf32>
    %36 = arith.mulf %10, %35 : vector<256x256xf32>
    %cst_23 = arith.constant dense<0xFF800000> : vector<256xf32>
    %37 = vector.multi_reduction <maximumf>, %36, %cst_23 [1] : vector<256x256xf32> to vector<256xf32>
    %38 = vector.shape_cast %37 : vector<256xf32> to vector<256x1xf32>
    %39 = vector.broadcast %38 : vector<256x1xf32> to vector<256x256xf32>
    %40 = arith.subf %36, %39 : vector<256x256xf32>
    %41 = math.exp %40 : vector<256x256xf32>
    %42 = arith.truncf %41 : vector<256x256xf32> to vector<256x256xbf16>
    %cst_24 = arith.constant dense<0.000000e+00> : vector<16x256xf32>
    %43 = tpu.matmul %5, %42, %cst_24 {dimension_numbers = #tpu.dot_dimension_numbers<[1], [1], [0], [0], [0, 0, 1, 0], [], []>} : vector<16x256xbf16>, vector<256x256xbf16>, vector<16x256xf32> -> vector<16x256xf32>
    %44 = vector.extract_strided_slice %43 {offsets = [8, 0], sizes = [1, 256], strides = [1, 1]} : vector<16x256xf32> to vector<1x256xf32>
    %45 = tpu.reciprocal %44 : vector<1x256xf32> -> vector<1x256xf32>
    %46 = arith.mulf %34, %45 : vector<1x256xf32>
    %47 = vector.extract_strided_slice %43 {offsets = [0, 0], sizes = [8, 256], strides = [1, 1]} : vector<16x256xf32> to vector<8x256xf32>
    %48 = vector.broadcast %46 : vector<1x256xf32> to vector<8x256xf32>
    %49 = arith.mulf %47, %48 : vector<8x256xf32>
    %50 = arith.truncf %49 : vector<8x256xf32> to vector<8x256xbf16>
    %c0_25 = arith.constant 0 : index
    %c0_26 = arith.constant 0 : index
    %51 = vector.load %arg9[%c0_25, %c0_26] : memref<8x4xbf16, #tpu.memory_space<vmem>>, vector<8x4xbf16>
    %cst_27 = arith.constant dense<0.000000e+00> : vector<4x256xf32>
    %52 = tpu.matmul %51, %32, %cst_27 {dimension_numbers = #tpu.dot_dimension_numbers<[0], [0], [1], [1], [0, 1, 1, 1], [], []>} : vector<8x4xbf16>, vector<8x256xbf16>, vector<4x256xf32> -> vector<4x256xf32>
    %c0_28 = arith.constant 0 : index
    %c0_29 = arith.constant 0 : index
    %53 = vector.load %arg10[%c0_28, %c0_29] : memref<8x4xbf16, #tpu.memory_space<vmem>>, vector<8x4xbf16>
    %cst_30 = arith.constant dense<0.000000e+00> : vector<4x256xf32>
    %54 = tpu.matmul %53, %50, %cst_30 {dimension_numbers = #tpu.dot_dimension_numbers<[0], [0], [1], [1], [0, 1, 1, 1], [], []>} : vector<8x4xbf16>, vector<8x256xbf16>, vector<4x256xf32> -> vector<4x256xf32>
    %55 = arith.addf %52, %54 : vector<4x256xf32>
    %c0_31 = arith.constant 0 : index
    %c0_32 = arith.constant 0 : index
    %56 = vector.load %arg11[%c0_31, %c0_32] : memref<4x1xf32, #tpu.memory_space<vmem>>, vector<4x1xf32>
    %57 = vector.broadcast %56 : vector<4x1xf32> to vector<4x256xf32>
    %58 = arith.addf %55, %57 : vector<4x256xf32>
    %59 = arith.addf %58, %1 : vector<4x256xf32>
    %c0_33 = arith.constant 0 : index
    %c0_34 = arith.constant 0 : index
    %c0_35 = arith.constant 0 : index
    %60 = vector.load %arg12[%c0_33, %c0_34, %c0_35] : memref<1x4x256xf32, #tpu.memory_space<vmem>>, vector<1x4x256xf32>
    %61 = vector.shape_cast %60 : vector<1x4x256xf32> to vector<4x256xf32>
    %62 = vector.shape_cast %59 : vector<4x256xf32> to vector<1x4x256xf32>
    tpu.vector_store %arg12[%c0_33, %c0_34, %c0_35], %62 {strides = array<i32>} : memref<1x4x256xf32, #tpu.memory_space<vmem>>, vector<1x4x256xf32>,
    return
  }
  func.func @transform_0(%arg0: i32, %arg1: i32) -> (i32, i32, i32) {
    %c0_i32 = arith.constant 0 : i32
    %c0_i32_0 = arith.constant 0 : i32
    return %arg0, %c0_i32, %arg1 : i32, i32, i32
  }
  func.func @transform_1(%arg0: i32, %arg1: i32) -> (i32, i32, i32) {
    %c0_i32 = arith.constant 0 : i32
    %c0_i32_0 = arith.constant 0 : i32
    %c0_i32_1 = arith.constant 0 : i32
    return %arg0, %c0_i32, %c0_i32_0 : i32, i32, i32
  }
  func.func @transform_2(%arg0: i32, %arg1: i32) -> (i32, i32, i32) {
    %c0_i32 = arith.constant 0 : i32
    %c0_i32_0 = arith.constant 0 : i32
    %c0_i32_1 = arith.constant 0 : i32
    return %arg0, %c0_i32, %c0_i32_0 : i32, i32, i32
  }
  func.func @transform_3(%arg0: i32, %arg1: i32) -> (i32, i32, i32) {
    %c0_i32 = arith.constant 0 : i32
    %c0_i32_0 = arith.constant 0 : i32
    return %arg0, %c0_i32, %arg1 : i32, i32, i32
  }
  func.func @transform_4(%arg0: i32, %arg1: i32) -> (i32, i32, i32) {
    %c0_i32 = arith.constant 0 : i32
    %c0_i32_0 = arith.constant 0 : i32
    %c0_i32_1 = arith.constant 0 : i32
    return %arg0, %c0_i32, %c0_i32_0 : i32, i32, i32
  }
  func.func @transform_5(%arg0: i32, %arg1: i32) -> (i32, i32, i32) {
    %c0_i32 = arith.constant 0 : i32
    %c0_i32_0 = arith.constant 0 : i32
    %c0_i32_1 = arith.constant 0 : i32
    return %arg0, %c0_i32, %c0_i32_0 : i32, i32, i32
  }
  func.func @transform_6(%arg0: i32, %arg1: i32) -> (i32, i32) {
    %c0_i32 = arith.constant 0 : i32
    %c0_i32_0 = arith.constant 0 : i32
    %c0_i32_1 = arith.constant 0 : i32
    return %c0_i32, %c0_i32_0 : i32, i32
  }
  func.func @transform_7(%arg0: i32, %arg1: i32) -> (i32, i32) {
    %c0_i32 = arith.constant 0 : i32
    %c0_i32_0 = arith.constant 0 : i32
    %c0_i32_1 = arith.constant 0 : i32
    return %c0_i32, %c0_i32_0 : i32, i32
  }
  func.func @transform_8(%arg0: i32, %arg1: i32) -> (i32, i32) {
    %c0_i32 = arith.constant 0 : i32
    %c0_i32_0 = arith.constant 0 : i32
    %c0_i32_1 = arith.constant 0 : i32
    return %c0_i32, %c0_i32_0 : i32, i32
  }
  func.func @transform_9(%arg0: i32, %arg1: i32) -> (i32, i32) {
    %c0_i32 = arith.constant 0 : i32
    %c0_i32_0 = arith.constant 0 : i32
    %c0_i32_1 = arith.constant 0 : i32
    return %c0_i32, %c0_i32_0 : i32, i32
  }
  func.func @transform_10(%arg0: i32, %arg1: i32) -> (i32, i32, i32) {
    %c0_i32 = arith.constant 0 : i32
    %c0_i32_0 = arith.constant 0 : i32
    return %arg0, %c0_i32, %arg1 : i32, i32, i32
  }
}

</mosaic_0001>

<bundles_post_ra>
// kernel: tpu_custom_call.1
= control target key start
LH: loop header
LB: loop body
LE: loop exit
PB: predicated region body
PF: predicated region fallthrough
CT: control target
= control target key end

     0   :  { %s4243_s0 = inlined_call_operand.hbm [shape: f32[2,4,256], index: 0, kind: input, shape index: {}]   ;;  %s4244_s1 = inlined_call_operand.hbm [shape: bf16[2,8,256], index: 1, kind: input, shape index: {}]   ;;  %s4245_s2 = inlined_call_operand.hbm [shape: bf16[2,16,256], index: 2, kind: input, shape index: {}]   ;;  %s4246_s3 = inlined_call_operand.vmem [shape: f32[2,1,256], index: 3, kind: input, shape index: {}]   ;;  %s4247_s4 = inlined_call_operand.vmem [shape: f32[2,1,256], index: 4, kind: input, shape index: {}]   ;;  %s4248_s5 = inlined_call_operand.vmem [shape: f32[2,1,256], index: 5, kind: input, shape index: {}]   ;;  %s4249_s6 = inlined_call_operand.vmem [shape: bf16[8,4], index: 6, kind: input, shape index: {}]   ;;  %s4250_s7 = inlined_call_operand.vmem [shape: bf16[8,4], index: 7, kind: input, shape index: {}]   ;;  %s4251_s8 = inlined_call_operand.vmem [shape: bf16[8,4], index: 8, kind: input, shape index: {}]   ;;  %s4252_s9 = inlined_call_operand.vmem [shape: f32[4,1], index: 9, kind: input, shape index: {}]   ;;  %s4253_s10 = inlined_call_operand.hbm [shape: f32[2,4,256], index: 10, kind: output, shape index: {}]  }
   0x1   :  { %4388 = sst [smem:[#allocation109_spill]] %s4244_s1 }
   0x2   :  { %4389 = sst [smem:[#allocation110_spill]] %s4246_s3 }
   0x3   :  { %4390 = sst [smem:[#allocation111_spill]] %s4250_s7 }
   0x4   :  { %4391 = sst [smem:[#allocation112_spill]] %s4251_s8 }
   0x5   :  { %4392 = sst [smem:[#allocation113_spill]] %s4252_s9 }
   0x6   :  { %4393 = sst [smem:[#allocation114_spill]] %s4253_s10 }
   0x7   :  { %15 = vsyncpa [#allocation3], 0 }
   0x8   :  { %17 = vsyncpa [#allocation3 + $0x1], 0 }
   0x9   :  { %18 = vsyncpa [#allocation6], 0 }
   0xa   :  { %20 = vsyncpa [#allocation6 + $0x1], 0 }
   0xb   :  { %21 = vsyncpa [#allocation4], 0 }
   0xc   :  { %23 = vsyncpa [#allocation4 + $0x1], 0  ;;  %s2816_s13 = smov 0   ;;  %s2818_s14 = smov 0  }
   0xd   :  { %s2820_s15 = smov 0   ;;  %s2822_s16 = smov 0  }
   0xe   :  { %s2824_s17 = smov 0   ;;  %s2826_s18 = smov 0  }
   0xf LB: > { %4394 = sst [smem:[#allocation12_spill]] %s2736_s13  ;;  %s2847_s19 = sadd.s32 4294967295, %s2756_s18   ;;  %s2756_s18 = sphi %s2826_s18, %s29_s18   ;;  %s2752_s17 = sphi %s2824_s17, %s4685_s17   ;;  %s2748_s16 = sphi %s2822_s16, %s4684_s16   ;;  %s2744_s15 = sphi %s2820_s15, %s4680_s15   ;;  %s2740_s14 = sphi %s2818_s14, %s4683_s14   ;;  %s2736_s13 = sphi %s2816_s13, %s4682_s13  }
  0x10   : > { %4395 = sst [smem:[#allocation13_spill]] %s2744_s15  ;;  %s2162_s20 = sadd.s32 4294967294, %s2756_s18  }
  0x11   : > { %4396 = sst [smem:[#allocation14_spill]] %s2756_s18  ;;  %s41_s21 = sadd.s32 1, %s2752_s17 }
  0x12   : > { %s50_s22 = sadd.s32 1, %s2744_s15  ;;  %p43_p0 = scmp.ge.s32.totalorder %s41_s21, 2 }
  0x13   : > { %p57_p1 = scmp.ne.s32.totalorder %s2744_s15, %s2740_s14  ;;  %p58_p2 = scmp.eq.s32.totalorder %s2756_s18, 0 }
  0x14   : > { %p63_p3 = scmp.ne.s32.totalorder %s2740_s14, %s2736_s13  ;;  %s4687_s21 = smov (%p43_p0, %s41_s21), 0 }
  0x15   : > { %4397 = sst [smem:[#allocation15_spill]] %s4687_s21  ;;  %p2859_p4 = por %p58_p2, %p57_p1 }
  0x16   : > { %p64_p5 = scmp.eq.s32.totalorder %s2847_s19, 0  ;;  %s45_s24 = ssub.s32 %s2752_s17, %s4687_s21 }
  0x17   : > { %p305_p6 = scmp.eq.s32.totalorder %s2847_s19, 1  ;;  %p48_p7 = scmp.eq.s32.totalorder %s45_s24, 0 }
  0x18   : > { %p2867_p8 = por %p64_p5, %p63_p3  ;;  %p311_p10 = scmp.eq.s32.totalorder %s2162_s20, 1 }
  0x19   : > { %p2871_p9 = por %p305_p6, %p57_p1  ;;  %p2164_p12 = scmp.ge.s32.totalorder %s2756_s18, 2 }
  0x1a   : > { %s2876_s27 = scalar_select %p48_p7, %s2744_s15, %s50_s22  }
  0x1b   : > { %s4400_s26 = scalar_select %p2871_p9, 1, 0 }
  0x1c   : > { %4402 = sst [smem:[#allocation17_spill]] %s2876_s27  ;;  %p2878_p11 = por %p311_p10, %p63_p3 }
  0x1d   : > { %4401 = sst [smem:[#allocation16_spill]] %s4400_s26  ;;  %p2261_p13 = scmp.lt.s32.totalorder %s2756_s18, 2 }
  0x1e   : > { %s4403_s28 = scalar_select %p2878_p11, 1, 0 }
  0x1f   : > { %s2885_s29 = sand.u32 1, %s2744_s15   ;;  %s2233_s11 = sshll.u32 %s2752_s17, 3 }
  0x20   : > { %4404 = sst [smem:[#allocation18_spill]] %s4403_s28  ;;  %s2165_s30 = sshll.u32 %s2885_s29, 3 }
  0x21   : > { %p2891_p0 = pnand %p2261_p13, %p2859_p4  ;;  %s365_s20 = sand.u32 1, %s2756_s18  }
  0x22   : > { %s4406_s1 = sld [smem:[#allocation109_spill]]  ;;  %s369_s28 = scalar_lea.vmem [#allocation5], %s2165_s30 }
  0x23   : > { %s378_s13 = sshll.u32 %s369_s28, 4  ;;  %s366_s15 = scalar_lea.sflag [#allocation6], %s365_s20  ;;  %s379_s13 = int_to_ptr.vmem [resolvable:$true] %s378_s13 }
  0x24   : > { %s2171_s23 = sshll.u32 %s2885_s29, 4  ;;  %p2174_p1 = scmp.ge.s32.totalorder %s2756_s18, 1 }
  0x25   : > { %p431_p2 = scmp.lt.s32.totalorder %s2756_s18, 3  ;;  %s389_s26 = scalar_lea.vmem [#allocation7], %s2171_s23 }
  0x26   : > { %s397_s10 = sshll.u32 %s389_s26, 4  ;;  %s354_s24 = scalar_lea.hbm %s4243_s0, %s2233_s11  ;;  %s398_s10 = int_to_ptr.vmem [resolvable:$true] %s397_s10 }
  0x27   : > { %p2904_p3 = pnand %p2174_p1, %p431_p2  ;;  %s356_s20 = sshll.u32 %s354_s24, 4  ;;  %s357_s20 = int_to_ptr.hbm [resolvable:$true] %s356_s20 }
  0x28   : > { %s374_s21 = scalar_lea.hbm %s4406_s1, %s2233_s11  ;;  %s347_s1 = scalar_lea.vmem [#allocation2], %s2165_s30 }
  0x29   : > { %s376_s27 = sshll.u32 %s374_s21, 4  ;;  %s358_s9 = sshll.u32 %s347_s1, 4  ;;  %s377_s27 = int_to_ptr.hbm [resolvable:$true] %s376_s27  ;;  %s359_s9 = int_to_ptr.vmem [resolvable:$true] %s358_s9 }
  0x2a   : > { %2253 = dma.hbm_to_vmem [thread:$0]  (!%p2891_p0), %s377_s27, 128, %s379_s13, %s366_s15  }
  0x2b   : > { %s344_s13 = scalar_lea.sflag [#allocation3], %s2885_s29  ;;  %s2235_s27 = sshll.u32 %s2752_s17, 4 }
  0x2c   : > { %2250 = dma.hbm_to_vmem [thread:$0]  (!%p2891_p0), %s357_s20, 128, %s359_s9, %s344_s13  }
  0x2d   : > { %s394_s18 = scalar_lea.hbm %s4245_s2, %s2235_s27  ;;  %s2758_s8 = smov 128  }
  0x2e   : > { %s395_s3 = sshll.u32 %s394_s18, 4  ;;  %s2759_s7 = smov 8   ;;  %s396_s3 = int_to_ptr.hbm [resolvable:$true] %s395_s3 }
  0x2f   : > { %2256 = dma.hbm_to_vmem [thread:$0]  (!%p2891_p0), %s396_s3, 256, %s398_s10, %s366_s15, %s2758_s8, %s2758_s8, %s2759_s7  }
  0x30   : > { %435 = sbr.rel (%p2904_p3) target bundleno = 1395 (0x573), region = 60 }
  0x35   : > { %s2923_s1 = sand.u32 1, %s2740_s14  }
  0x36   : > { %s2926_s9 = sshll.u32 %s2923_s1, 3  ;;  %s438_s29 = scalar_lea.sflag [#allocation3], %s2923_s1 }
  0x37   : > { %s441_s30 = scalar_lea.vmem [#allocation2], %s2926_s9 }
  0x38   : > { %2723 = dma.done.wait (%p2867_p8), %s438_s29, 128  }
  0x39   : > { %2725 = vsyncadd (%p2867_p8), %s438_s29, 4294967168  ;;  %s447_s3 = sand.u32 1, %s2847_s19   ;;  %s451_s8 = scalar_lea.vmem [#allocation5], %s2926_s9 }
  0x3a   : > { %s448_s7 = scalar_lea.sflag [#allocation6], %s447_s3 }
  0x3b   : > { %2727 = dma.done.wait (%p2867_p8), %s448_s7, 384  }
  0x3c   : > { %2729 = vsyncadd (%p2867_p8), %s448_s7, 4294966912  ;;  %v545_v0 = vld [vmem:[%s441_s30] sm:$0xff]  ;;  %vm562_vm0 = vcmask 1041408   ;;  %v549_v7 = vld [vmem:[%s4249_s6] sm:$0xf]  ;;  %vm558_vm1 = vcmask 31744  }
  0x3d   : > { %551 = vst [vmem:[#allocation1] ss:$2 sm:$0xff] %v545_v0  ;;  %v546_v8 = vld [vmem:[%s451_s8] sm:$0xff]  ;;  %vm675_vm2 = vcmask 1043456   ;;  %vm626_vm3 = vcmask 64512   ;;  %p527_p4 = scmp.lt.s32.totalorder %s2748_s16, 1 }
  0x3e   : > { %v622_v9 = vunpack.c.l.b16 %v546_v8  ;;  %v623_v10 = vunpack.c.h.b16 %v546_v8  ;;  %s2177_s24 = sshll.u32 %s2923_s1, 4  ;;  %s4660_s26 = sld [smem:[#allocation111_spill]]  ;;  %vm1349_vm12 = vcmask 1040384  }
  0x3f   : > { %s528_s18 = scalar_select %p527_p4, %s2748_s16, 1 }
  0x40   : > { %v624_v11 = vpack.c.b16 %v622_v9, %v622_v9  ;;  %v625_v12 = vpack.c.b16 %v623_v10, %v623_v10  ;;  %s461_s20 = scalar_lea.vmem [#allocation7], %s2177_s24  ;;  %s4662_s30 = sld [smem:[#allocation112_spill]] }
  0x41   : > { %s3019_s19 = sshll.u32 %s528_s18, 1  ;;  %s4672_s8 = sld [smem:[#allocation110_spill]] }
  0x42   : > { %v677_v13 = vsel %vm675_vm2, %v624_v11, 0  ;;  %v680_v14 = vsel %vm675_vm2, %v625_v12, 0  ;;  %s538_s12 = scalar_lea.vmem %s4247_s4, %s3019_s19  ;;  %s542_s28 = scalar_lea.vmem %s4248_s5, %s3019_s19 }
  0x43   : > { %689 = vmatpush.bf16.msra.mxu2 %v677_v13  ;;  %778 = vmatpush.bf16.msra.mxu3 %v680_v14  ;;  %v861_v60 = vld [vmem:[%s538_s12] sm:$0x3]  ;;  %s2238_s25 = sshll.u32 %s2748_s16, 3  ;;  %s4674_s22 = sld [smem:[#allocation114_spill]] }
  0x44   : > { %v552_v1 = vld.sshfl [vmem:[#allocation1] sm:$0xff pattern:$0x75316420]  ;;  %v553_v2 = vld.sshfl [vmem:[#allocation1 + $0x8] sm:$0xff pattern:$0x75316420] }
  0x45   : > { %v556_v3 = vpack.c.bf16 %v552_v1, %v552_v1  ;;  %v557_v4 = vpack.c.bf16 %v553_v2, %v553_v2  ;;  %1963 = vst [vmem:[#allocation1] ss:$2 sm:$0xff] %v545_v0  ;;  %v3031_v61 = vperm.slane %v861_v60, 0  ;;  %v3033_v62 = vperm.slane %v861_v60, 1  ;;  %s1977_s16 = scalar_lea.sflag [#allocation4], %s2923_s1 }
  0x47   : > { %v564_v5 = vsel %vm562_vm0, %v556_v3, 0  ;;  %v567_v6 = vsel %vm562_vm0, %v557_v4, 0  ;;  %s533_s10 = scalar_lea.vmem %s4672_s8, %s3019_s19  ;;  %s4673_s19 = sld [smem:[#allocation113_spill]] }
  0x48   : > { %576 = vmatpush.bf16.msra.mxu0 %v564_v5  ;;  %589 = vmatpush.bf16.msra.mxu1 %v567_v6 }
  0x49   : > { %s1990_s21 = scalar_lea.hbm %s4674_s22, %s2238_s25  ;;  %s2690_s29 = scalar_lea.hbm %s4674_s22, 16 }
  0x4a   : > { %s1994_s13 = sshll.u32 %s1990_s21, 4  ;;  %s1995_s13 = int_to_ptr.hbm [resolvable:$true] %s1994_s13 }
  0x4b   : > { %2182 = vmatmul.msk.bf16.vlgmr.msra.gmra.mxu0 %vm558_vm1, %v549_v7  ;;  %2183 = vmatmul.msk.bf16.vlgmr.msra.gmra.mxu1 %vm558_vm1, %v549_v7  ;;  %s2684_s27 = sshra.s32 %s1995_s13, 4  ;;  %s2685_s27 = int_to_ptr.hbm [resolvable:$true] %s2684_s27 }
  0x4c   : > { %p2691_p8 = scmp.lt.s32.totalorder %s2685_s27, %s4674_s22 }
  0xc8   : > { %v578_v15 = vpop.f32.mrf.mxu0  ;;  %v591_v16 = vpop.f32.mrf.mxu1 }
  0xc9   : > { %v595_v17 = vpack.c.bf16 %v578_v15, %v578_v15  ;;  %v596_v18 = vpack.c.bf16 %v591_v16, %v591_v16 }
  0xcb   : > { %597 = vxpose.binary.xlu0.c.b16.start.end [1/2] (short) %v596_v18, %v595_v17, 128 }
  0xd0   : > { %v580_v19 = vpop.f32.mrf.mxu0  ;;  %v593_v20 = vpop.f32.mrf.mxu1 }
 0x177   : > { %v605_v21 = vpop.trf.xlu0 }
 0x178   : > { %2184 = vmatmul.msk.bf16.vlgmr.msra.gmra.mxu2 %vm626_vm3, %v605_v21  ;;  %2200 = vmatmul.msk.bf16.vlgmr.msra.gmra.mxu3 %vm626_vm3, %v605_v21 }
 0x17f   : > { %v606_v22 = vpop.trf.xlu0 }
 0x187   : > { %v607_v23 = vpop.trf.xlu0 }
 0x188   : > { %2185 = vmatmul.msk.bf16.gmra.mxu2 %vm626_vm3, %v607_v23  ;;  %2201 = vmatmul.msk.bf16.gmra.mxu3 %vm626_vm3, %v607_v23 }
 0x18f   : > { %v608_v24 = vpop.trf.xlu0 }
 0x197   : > { %v609_v25 = vpop.trf.xlu0 }
 0x198   : > { %2186 = vmatmul.msk.bf16.gmra.mxu2 %vm626_vm3, %v609_v25  ;;  %2202 = vmatmul.msk.bf16.gmra.mxu3 %vm626_vm3, %v609_v25 }
 0x19f   : > { %v610_v26 = vpop.trf.xlu0 }
 0x1a7   : > { %v611_v27 = vpop.trf.xlu0 }
 0x1a8   : > { %2187 = vmatmul.msk.bf16.gmra.mxu2 %vm626_vm3, %v611_v27  ;;  %2203 = vmatmul.msk.bf16.gmra.mxu3 %vm626_vm3, %v611_v27 }
 0x1af   : > { %v612_v28 = vpop.trf.xlu0 }
 0x1b7   : > { %v613_v29 = vpop.trf.xlu0 }
 0x1b8   : > { %2188 = vmatmul.msk.bf16.gmra.mxu2 %vm626_vm3, %v613_v29  ;;  %2204 = vmatmul.msk.bf16.gmra.mxu3 %vm626_vm3, %v613_v29 }
 0x1bf   : > { %v614_v30 = vpop.trf.xlu0 }
 0x1c7   : > { %v615_v31 = vpop.trf.xlu0 }
 0x1c8   : > { %2189 = vmatmul.msk.bf16.gmra.mxu2 %vm626_vm3, %v615_v31  ;;  %2205 = vmatmul.msk.bf16.gmra.mxu3 %vm626_vm3, %v615_v31 }
 0x1cf   : > { %v616_v32 = vpop.trf.xlu0 }
 0x1d7   : > { %v617_v33 = vpop.trf.xlu0 }
 0x1d8   : > { %2190 = vmatmul.msk.bf16.gmra.mxu2 %vm626_vm3, %v617_v33  ;;  %2206 = vmatmul.msk.bf16.gmra.mxu3 %vm626_vm3, %v617_v33 }
 0x1df   : > { %v618_v34 = vpop.trf.xlu0 }
 0x1e7   : > { %v619_v35 = vpop.trf.xlu0 }
 0x1e8   : > { %2191 = vmatmul.msk.bf16.gmra.mxu2 %vm626_vm3, %v619_v35  ;;  %2207 = vmatmul.msk.bf16.gmra.mxu3 %vm626_vm3, %v619_v35 }
 0x1ef   : > { %v620_v10 = vpop.trf.xlu0 }
 0x1f8   : > { %2192 = vmatmul.msk.bf16.gmra.mxu2 %vm626_vm3, %v606_v22  ;;  %2208 = vmatmul.msk.bf16.gmra.mxu3 %vm626_vm3, %v606_v22 }
 0x1fb   : > { %v2963_v36 = vpop.f32.mrf.mxu2  ;;  %v2965_v37 = vpop.f32.mrf.mxu3 }
 0x1fc   : > { %4408 = vst [vmem:[#allocation19_spill] sm:$0xff] %v2963_v36 }
 0x1fd   : > { %4409 = vst [vmem:[#allocation20_spill] sm:$0xff] %v2965_v37 }
 0x203   : > { %v2967_v38 = vpop.f32.mrf.mxu2  ;;  %v2969_v39 = vpop.f32.mrf.mxu3 }
 0x204   : > { %4410 = vst [vmem:[#allocation21_spill] sm:$0xff] %v2967_v38 }
 0x205   : > { %4411 = vst [vmem:[#allocation22_spill] sm:$0xff] %v2969_v39 }
 0x208   : > { %2193 = vmatmul.msk.bf16.gmra.mxu2 %vm626_vm3, %v608_v24  ;;  %2209 = vmatmul.msk.bf16.gmra.mxu3 %vm626_vm3, %v608_v24 }
 0x20b   : > { %v2973_v40 = vpop.f32.mrf.mxu2  ;;  %v2975_v41 = vpop.f32.mrf.mxu3 }
 0x20c   : > { %4412 = vst [vmem:[#allocation23_spill] sm:$0xff] %v2973_v40 }
 0x20d   : > { %4413 = vst [vmem:[#allocation24_spill] sm:$0xff] %v2975_v41 }
 0x213   : > { %v2977_v42 = vpop.f32.mrf.mxu2  ;;  %v2979_v43 = vpop.f32.mrf.mxu3 }
 0x214   : > { %4414 = vst [vmem:[#allocation25_spill] sm:$0xff] %v2977_v42 }
 0x215   : > { %4415 = vst [vmem:[#allocation26_spill] sm:$0xff] %v2979_v43 }
 0x218   : > { %2194 = vmatmul.msk.bf16.gmra.mxu2 %vm626_vm3, %v610_v26  ;;  %2210 = vmatmul.msk.bf16.gmra.mxu3 %vm626_vm3, %v610_v26 }
 0x21b   : > { %v2983_v44 = vpop.f32.mrf.mxu2  ;;  %v2985_v45 = vpop.f32.mrf.mxu3 }
 0x21c   : > { %4416 = vst [vmem:[#allocation27_spill] sm:$0xff] %v2983_v44 }
 0x21d   : > { %4417 = vst [vmem:[#allocation28_spill] sm:$0xff] %v2985_v45 }
 0x223   : > { %v2987_v46 = vpop.f32.mrf.mxu2  ;;  %v2989_v47 = vpop.f32.mrf.mxu3 }
 0x224   : > { %4418 = vst [vmem:[#allocation29_spill] sm:$0xff] %v2987_v46  ;;  %v3143_v35 = vmul.f32 %v3033_v62, %v2989_v47 }
 0x225   : > { %4419 = vst [vmem:[#allocation30_spill] sm:$0xff] %v2989_v47 }
 0x226   : > { %4425 = vst [vmem:[#allocation36_spill] sm:$0xff] %v3143_v35 }
 0x228   : > { %2195 = vmatmul.msk.bf16.gmra.mxu2 %vm626_vm3, %v612_v28  ;;  %2211 = vmatmul.msk.bf16.gmra.mxu3 %vm626_vm3, %v612_v28 }
 0x22b   : > { %v2993_v48 = vpop.f32.mrf.mxu2  ;;  %v2995_v49 = vpop.f32.mrf.mxu3 }
 0x22c   : > { %v3135_v33 = vmul.f32 %v3033_v62, %v2995_v49 }
 0x22e   : > { %4423 = vst [vmem:[#allocation34_spill] sm:$0xff] %v3135_v33 }
 0x233   : > { %v2997_v50 = vpop.f32.mrf.mxu2  ;;  %v2999_v51 = vpop.f32.mrf.mxu3 }
 0x234   : > { %v3119_v26 = vmul.f32 %v3031_v61, %v2997_v50  ;;  %v3123_v27 = vmul.f32 %v3033_v62, %v2999_v51 }
 0x238   : > { %2196 = vmatmul.msk.bf16.gmra.mxu2 %vm626_vm3, %v614_v30  ;;  %2212 = vmatmul.msk.bf16.gmra.mxu3 %vm626_vm3, %v614_v30  ;;  %v953_v30 = vmax.f32 %v3119_v26, %v3123_v27 }
 0x23b   : > { %v3003_v52 = vpop.f32.mrf.mxu2  ;;  %v3005_v53 = vpop.f32.mrf.mxu3 }
 0x23c   : > { %v3111_v24 = vmul.f32 %v3031_v61, %v3003_v52  ;;  %v3115_v25 = vmul.f32 %v3033_v62, %v3005_v53 }
 0x23e   : > { %4420 = vst [vmem:[#allocation31_spill] sm:$0xff] %v3111_v24  ;;  %v956_v31 = vmax.f32 %v3111_v24, %v3115_v25 }
 0x23f   : > { %4421 = vst [vmem:[#allocation32_spill] sm:$0xff] %v3115_v25 }
 0x243   : > { %v3007_v54 = vpop.f32.mrf.mxu2  ;;  %v3009_v55 = vpop.f32.mrf.mxu3 }
 0x244   : > { %v3085_v15 = vmul.f32 %v3031_v61, %v3007_v54  ;;  %v3089_v16 = vmul.f32 %v3033_v62, %v3009_v55 }
 0x246   : > { %v959_v21 = vmax.f32 %v3085_v15, %v3089_v16 }
 0x248   : > { %2197 = vmatmul.msk.bf16.gmra.mxu2 %vm626_vm3, %v616_v32  ;;  %2213 = vmatmul.msk.bf16.gmra.mxu3 %vm626_vm3, %v616_v32  ;;  %v3131_v32 = vmul.f32 %v3031_v61, %v2993_v48 }
 0x24a   : > { %4422 = vst [vmem:[#allocation33_spill] sm:$0xff] %v3131_v32 }
 0x24b   : > { %v3014_v56 = vpop.f32.mrf.mxu2  ;;  %v3016_v57 = vpop.f32.mrf.mxu3 }
 0x24c   : > { %v3077_v13 = vmul.f32 %v3031_v61, %v3014_v56  ;;  %v3081_v14 = vmul.f32 %v3033_v62, %v3016_v57 }
 0x24e   : > { %v962_v22 = vmax.f32 %v3077_v13, %v3081_v14 }
 0x253   : > { %v3021_v58 = vpop.f32.mrf.mxu2  ;;  %v3023_v59 = vpop.f32.mrf.mxu3 }
 0x254   : > { %v3051_v4 = vmul.f32 %v3031_v61, %v3021_v58  ;;  %v3055_v5 = vmul.f32 %v3033_v62, %v3023_v59 }
 0x256   : > { %v965_v11 = vmax.f32 %v3051_v4, %v3055_v5 }
 0x258   : > { %2198 = vmatmul.msk.bf16.gmra.mxu2 %vm626_vm3, %v618_v34  ;;  %2214 = vmatmul.msk.bf16.gmra.mxu3 %vm626_vm3, %v618_v34  ;;  %v3139_v34 = vmul.f32 %v3031_v61, %v2987_v46 }
 0x25a   : > { %4424 = vst [vmem:[#allocation35_spill] sm:$0xff] %v3139_v34 }
 0x25b   : > { %v3035_v63 = vpop.f32.mrf.mxu2  ;;  %v3037_v0 = vpop.f32.mrf.mxu3 }
 0x25c   : > { %v3041_v1 = vmul.f32 %v3031_v61, %v3035_v63  ;;  %v3045_v2 = vmul.f32 %v3033_v62, %v3037_v0 }
 0x25e   : > { %v968_v3 = vmax.f32 %v3041_v1, %v3045_v2 }
 0x260   : > { %969 = vmax.xlane.f32.xlu1 %v968_v3 }
 0x263   : > { %v3057_v6 = vpop.f32.mrf.mxu2  ;;  %v3059_v7 = vpop.f32.mrf.mxu3 }
 0x264   : > { %v3063_v8 = vmul.f32 %v3031_v61, %v3057_v6  ;;  %v3067_v9 = vmul.f32 %v3033_v62, %v3059_v7 }
 0x266   : > { %v971_v12 = vmax.f32 %v3063_v8, %v3067_v9 }
 0x268   : > { %966 = vmax.xlane.f32.xlu1 %v965_v11  ;;  %972 = vmax.xlane.f32.xlu2 %v971_v12  ;;  %v950_v11 = vmax.f32 %v3131_v32, %v3135_v33  ;;  %v3155_v12 = vmul.f32 %v3031_v61, %v2983_v44 }
 0x269   : > { %2199 = vmatmul.msk.bf16.gmra.mxu2 %vm626_vm3, %v620_v10  ;;  %2215 = vmatmul.msk.bf16.gmra.mxu3 %vm626_vm3, %v620_v10  ;;  %v947_v10 = vmax.f32 %v3139_v34, %v3143_v35  ;;  %v3187_v35 = vmul.f32 %v3031_v61, %v2967_v38 }
 0x26a   : > { %4428 = vst [vmem:[#allocation39_spill] sm:$0xff] %v3155_v12 }
 0x26b   : > { %v3091_v17 = vpop.f32.mrf.mxu2  ;;  %v3093_v18 = vpop.f32.mrf.mxu3  ;;  %4436 = vst [vmem:[#allocation47_spill] sm:$0xff] %v3187_v35 }
 0x26c   : > { %v3097_v19 = vmul.f32 %v3031_v61, %v3091_v17  ;;  %v3101_v20 = vmul.f32 %v3033_v62, %v3093_v18 }
 0x26e   : > { %v974_v23 = vmax.f32 %v3097_v19, %v3101_v20 }
 0x270   : > { %960 = vmax.xlane.f32.xlu1 %v959_v21  ;;  %963 = vmax.xlane.f32.xlu2 %v962_v22  ;;  %v3159_v21 = vmul.f32 %v3033_v62, %v2985_v45  ;;  %v3163_v22 = vmul.f32 %v3031_v61, %v2977_v42  ;;  %v3179_v42 = vmul.f32 %v3031_v61, %v2973_v40  ;;  %v862_v40 = vld [vmem:[%s542_s28] sm:$0x3]  ;;  %s524_s28 = scalar_lea.vmem [#allocation8], %s2926_s9 }
 0x271   : > { %975 = vmax.xlane.f32.xlu0 %v974_v23  ;;  %v3167_v23 = vmul.f32 %v3033_v62, %v2979_v43  ;;  %v3183_v43 = vmul.f32 %v3033_v62, %v2975_v41 }
 0x272   : > { %4429 = vst [vmem:[#allocation40_spill] sm:$0xff] %v3159_v21 }
 0x273   : > { %v728_v28 = vpop.f32.mrf.mxu2  ;;  %v817_v29 = vpop.f32.mrf.mxu3  ;;  %4430 = vst [vmem:[#allocation41_spill] sm:$0xff] %v3163_v22  ;;  %v938_v38 = vmax.f32 %v3179_v42, %v3183_v43 }
 0x274   : > { %4431 = vst [vmem:[#allocation42_spill] sm:$0xff] %v3167_v23  ;;  %v3218_v47 = vmul.f32 %v3031_v61, %v728_v28 }
 0x275   : > { %4434 = vst [vmem:[#allocation45_spill] sm:$0xff] %v3179_v42 }
 0x276   : > { %4435 = vst [vmem:[#allocation46_spill] sm:$0xff] %v3183_v43 }
 0x278   : > { %954 = vmax.xlane.f32.xlu1 %v953_v30  ;;  %957 = vmax.xlane.f32.xlu2 %v956_v31 }
 0x27b   : > { %v3145_v60 = vpop.f32.mrf.mxu2  ;;  %v3147_v3 = vpop.f32.mrf.mxu3 }
 0x27c   : > { %4426 = vst [vmem:[#allocation37_spill] sm:$0xff] %v3145_v60 }
 0x27d   : > { %4427 = vst [vmem:[#allocation38_spill] sm:$0xff] %v3147_v3 }
 0x280   : > { %948 = vmax.xlane.f32.xlu1 %v947_v10  ;;  %951 = vmax.xlane.f32.xlu2 %v950_v11  ;;  %v941_v10 = vmax.f32 %v3163_v22, %v3167_v23  ;;  %v944_v11 = vmax.f32 %v3155_v12, %v3159_v21  ;;  %v3191_v23 = vmul.f32 %v3033_v62, %v2969_v39  ;;  %v3205_v22 = vperm.slane %v862_v40, 0 }
 0x281   : > { %v3207_v39 = vperm.slane %v862_v40, 1  ;;  %v3211_v21 = vmul.f32 %v3031_v61, %v2963_v36  ;;  %v3215_v12 = vmul.f32 %v3033_v62, %v2965_v37 }
 0x282   : > { %4437 = vst [vmem:[#allocation48_spill] sm:$0xff] %v3191_v23  ;;  %v935_v41 = vmax.f32 %v3187_v35, %v3191_v23  ;;  %v3221_v23 = vmul.f32 %v3033_v62, %v817_v29  ;;  %v3237_v42 = vmul.f32 %v3205_v22, %v3091_v17  ;;  %v3244_v45 = vmul.f32 %v3205_v22, %v728_v28 }
 0x283   : > { %v3169_v30 = vpop.f32.mrf.mxu2  ;;  %v3171_v31 = vpop.f32.mrf.mxu3  ;;  %4440 = vst [vmem:[#allocation51_spill] sm:$0xff] %v3211_v21  ;;  %v932_v36 = vmax.f32 %v3211_v21, %v3215_v12  ;;  %v3241_v46 = vmul.f32 %v3207_v39, %v3093_v18  ;;  %v3263_v17 = vmul.f32 %v3033_v62, %v3147_v3 }
 0x284   : > { %4432 = vst [vmem:[#allocation43_spill] sm:$0xff] %v3169_v30  ;;  %v977_v37 = vmax.f32 %v3218_v47, %v3221_v23  ;;  %v3267_v18 = vmul.f32 %v3031_v61, %v3169_v30  ;;  %v3271_v28 = vmul.f32 %v3033_v62, %v3171_v31 }
 0x285   : > { %4433 = vst [vmem:[#allocation44_spill] sm:$0xff] %v3171_v31 }
 0x286   : > { %4441 = vst [vmem:[#allocation52_spill] sm:$0xff] %v3215_v12  ;;  %v3247_v12 = vmul.f32 %v3207_v39, %v817_v29 }
 0x287   : > { %4446 = vst [vmem:[#allocation57_spill] sm:$0xff] %v3271_v28 }
 0x288   : > { %942 = vmax.xlane.f32.xlu1 %v941_v10  ;;  %945 = vmax.xlane.f32.xlu2 %v944_v11 }
 0x28b   : > { %v3197_v10 = vpop.f32.mrf.mxu2  ;;  %v3199_v11 = vpop.f32.mrf.mxu3 }
 0x28c   : > { %4438 = vst [vmem:[#allocation49_spill] sm:$0xff] %v3197_v10  ;;  %v3283_v30 = vmul.f32 %v3031_v61, %v3197_v10  ;;  %v3287_v31 = vmul.f32 %v3033_v62, %v3199_v11 }
 0x28d   : > { %4439 = vst [vmem:[#allocation50_spill] sm:$0xff] %v3199_v11 }
 0x28e   : > { %4449 = vst [vmem:[#allocation60_spill] sm:$0xff] %v3283_v30 }
 0x28f   : > { %4450 = vst [vmem:[#allocation61_spill] sm:$0xff] %v3287_v31 }
 0x290   : > { %936 = vmax.xlane.f32.xlu1 %v935_v41  ;;  %939 = vmax.xlane.f32.xlu2 %v938_v38 }
 0x293   : > { %v738_v41 = vpop.f32.mrf.mxu2  ;;  %v827_v38 = vpop.f32.mrf.mxu3 }
 0x294   : > { %v3224_v35 = vmul.f32 %v3205_v22, %v738_v41  ;;  %v3227_v40 = vmul.f32 %v3207_v39, %v827_v38  ;;  %v3290_v3 = vmul.f32 %v3031_v61, %v738_v41 }
 0x296   : > { %4442 = vst [vmem:[#allocation53_spill] sm:$0xff] %v3224_v35  ;;  %v1489_v43 = vmax.f32 %v3224_v35, %v3227_v40  ;;  %v983_v35 = vmax.f32 %v3267_v18, %v3271_v28 }
 0x297   : > { %4443 = vst [vmem:[#allocation54_spill] sm:$0xff] %v3227_v40 }
 0x298   : > { %933 = vmax.xlane.f32.xlu2 %v932_v36  ;;  %978 = vmax.xlane.f32.xlu1 %v977_v37  ;;  %v1474_v36 = vmax.f32 %v3237_v42, %v3241_v46  ;;  %v1477_v37 = vmax.f32 %v3244_v45, %v3247_v12  ;;  %4451 = vst [vmem:[#allocation62_spill] sm:$0xff] %v3290_v3 }
 0x299   : > { %1490 = vmax.xlane.f32.xlu0 %v1489_v43  ;;  %v3259_v43 = vmul.f32 %v3031_v61, %v3145_v60  ;;  %v3293_v60 = vmul.f32 %v3033_v62, %v827_v38 }
 0x29b   : > { %v3249_v21 = vpop.f32.mrf.mxu2  ;;  %v3251_v40 = vpop.f32.mrf.mxu3  ;;  %4452 = vst [vmem:[#allocation63_spill] sm:$0xff] %v3293_v60 }
 0x29c   : > { %4444 = vst [vmem:[#allocation55_spill] sm:$0xff] %v3249_v21  ;;  %v3305_v11 = vmul.f32 %v3031_v61, %v3249_v21  ;;  %v3309_v41 = vmul.f32 %v3033_v62, %v3251_v40 }
 0x29d   : > { %4445 = vst [vmem:[#allocation56_spill] sm:$0xff] %v3251_v40 }
 0x29e   : > { %4455 = vst [vmem:[#allocation66_spill] sm:$0xff] %v3305_v11 }
 0x29f   : > { %4456 = vst [vmem:[#allocation67_spill] sm:$0xff] %v3309_v41 }
 0x2a0   : > { %1475 = vmax.xlane.f32.xlu2 %v1474_v36  ;;  %1478 = vmax.xlane.f32.xlu1 %v1477_v37  ;;  %v980_v37 = vmax.f32 %v3259_v43, %v3263_v17 }
 0x2a3   : > { %v3273_v29 = vpop.f32.mrf.mxu2  ;;  %v3275_v36 = vpop.f32.mrf.mxu3 }
 0x2a4   : > { %4447 = vst [vmem:[#allocation58_spill] sm:$0xff] %v3273_v29  ;;  %v3313_v38 = vmul.f32 %v3031_v61, %v3273_v29  ;;  %v3317_v10 = vmul.f32 %v3033_v62, %v3275_v36 }
 0x2a5   : > { %4448 = vst [vmem:[#allocation59_spill] sm:$0xff] %v3275_v36 }
 0x2a6   : > { %4457 = vst [vmem:[#allocation68_spill] sm:$0xff] %v3313_v38  ;;  %v995_v21 = vmax.f32 %v3313_v38, %v3317_v10 }
 0x2a7   : > { %4458 = vst [vmem:[#allocation69_spill] sm:$0xff] %v3317_v10 }
 0x2a8   : > { %981 = vmax.xlane.f32.xlu2 %v980_v37  ;;  %984 = vmax.xlane.f32.xlu1 %v983_v35  ;;  %v986_v35 = vmax.f32 %v3283_v30, %v3287_v31  ;;  %v989_v37 = vmax.f32 %v3290_v3, %v3293_v60 }
 0x2ab   : > { %v3295_v44 = vpop.f32.mrf.mxu2  ;;  %v3297_v33 = vpop.f32.mrf.mxu3 }
 0x2ac   : > { %4453 = vst [vmem:[#allocation64_spill] sm:$0xff] %v3295_v44  ;;  %v3329_v29 = vmul.f32 %v3031_v61, %v3295_v44  ;;  %v3333_v36 = vmul.f32 %v3033_v62, %v3297_v33 }
 0x2ad   : > { %4454 = vst [vmem:[#allocation65_spill] sm:$0xff] %v3297_v33 }
 0x2ae   : > { %4461 = vst [vmem:[#allocation72_spill] sm:$0xff] %v3329_v29 }
 0x2af   : > { %4462 = vst [vmem:[#allocation73_spill] sm:$0xff] %v3333_v36 }
 0x2b0   : > { %987 = vmax.xlane.f32.xlu2 %v986_v35  ;;  %990 = vmax.xlane.f32.xlu1 %v989_v37  ;;  %v992_v37 = vmax.f32 %v3305_v11, %v3309_v41 }
 0x2b3   : > { %v3319_v32 = vpop.f32.mrf.mxu2  ;;  %v3321_v35 = vpop.f32.mrf.mxu3 }
 0x2b4   : > { %4459 = vst [vmem:[#allocation70_spill] sm:$0xff] %v3319_v32  ;;  %v3337_v40 = vmul.f32 %v3031_v61, %v3319_v32  ;;  %v3341_v41 = vmul.f32 %v3033_v62, %v3321_v35 }
 0x2b5   : > { %4460 = vst [vmem:[#allocation71_spill] sm:$0xff] %v3321_v35 }
 0x2b6   : > { %4463 = vst [vmem:[#allocation74_spill] sm:$0xff] %v3337_v40  ;;  %v1001_v44 = vmax.f32 %v3337_v40, %v3341_v41 }
 0x2b7   : > { %4464 = vst [vmem:[#allocation75_spill] sm:$0xff] %v3341_v41 }
 0x2b8   : > { %993 = vmax.xlane.f32.xlu2 %v992_v37  ;;  %996 = vmax.xlane.f32.xlu1 %v995_v21  ;;  %v998_v21 = vmax.f32 %v3329_v29, %v3333_v36 }
 0x2bb   : > { %v3343_v11 = vpop.f32.mrf.mxu2  ;;  %v3345_v37 = vpop.f32.mrf.mxu3 }
 0x2bc   : > { %4465 = vst [vmem:[#allocation76_spill] sm:$0xff] %v3343_v11  ;;  %v3353_v32 = vmul.f32 %v3031_v61, %v3343_v11  ;;  %v3357_v35 = vmul.f32 %v3033_v62, %v3345_v37 }
 0x2bd   : > { %4466 = vst [vmem:[#allocation77_spill] sm:$0xff] %v3345_v37 }
 0x2be   : > { %4467 = vst [vmem:[#allocation78_spill] sm:$0xff] %v3353_v32 }
 0x2bf   : > { %4468 = vst [vmem:[#allocation79_spill] sm:$0xff] %v3357_v35 }
 0x2c0   : > { %999 = vmax.xlane.f32.xlu2 %v998_v21  ;;  %1002 = vmax.xlane.f32.xlu1 %v1001_v44  ;;  %v1004_v44 = vmax.f32 %v3353_v32, %v3357_v35 }
 0x2c3   : > { %v3359_v33 = vpop.f32.mrf.mxu2  ;;  %v3361_v10 = vpop.f32.mrf.mxu3 }
 0x2c4   : > { %4469 = vst [vmem:[#allocation80_spill] sm:$0xff] %v3359_v33  ;;  %v3365_v36 = vmul.f32 %v3031_v61, %v3359_v33  ;;  %v3369_v21 = vmul.f32 %v3033_v62, %v3361_v10 }
 0x2c5   : > { %4470 = vst [vmem:[#allocation81_spill] sm:$0xff] %v3361_v10 }
 0x2c6   : > { %4471 = vst [vmem:[#allocation82_spill] sm:$0xff] %v3365_v36  ;;  %v1007_v41 = vmax.f32 %v3365_v36, %v3369_v21 }
 0x2c7   : > { %4472 = vst [vmem:[#allocation83_spill] sm:$0xff] %v3369_v21 }
 0x2c8   : > { %1005 = vmax.xlane.f32.xlu2 %v1004_v44  ;;  %1008 = vmax.xlane.f32.xlu1 %v1007_v41 }
 0x2cb   : > { %v3375_v40 = vpop.f32.mrf.mxu2  ;;  %v3377_v29 = vpop.f32.mrf.mxu3 }
 0x2cc   : > { %4473 = vst [vmem:[#allocation84_spill] sm:$0xff] %v3375_v40  ;;  %v3381_v33 = vmul.f32 %v3031_v61, %v3375_v40  ;;  %v3385_v10 = vmul.f32 %v3033_v62, %v3377_v29 }
 0x2cd   : > { %4474 = vst [vmem:[#allocation85_spill] sm:$0xff] %v3377_v29 }
 0x2ce   : > { %4475 = vst [vmem:[#allocation86_spill] sm:$0xff] %v3381_v33  ;;  %v1010_v35 = vmax.f32 %v3381_v33, %v3385_v10 }
 0x2cf   : > { %4476 = vst [vmem:[#allocation87_spill] sm:$0xff] %v3385_v10 }
 0x2d0   : > { %1011 = vmax.xlane.f32.xlu2 %v1010_v35 }
 0x2d3   : > { %v3389_v32 = vpop.xlane.xlu1 %969  ;;  %v3391_v44 = vpop.f32.mrf.mxu2 }
 0x2d4   : > { %4477 = vst [vmem:[#allocation88_spill] sm:$0xff] %v3391_v44  ;;  %v3395_v41 = vmul.f32 %v3031_v61, %v3391_v44  ;;  %v3397_v21 = vpop.f32.mrf.mxu3 }
 0x2d5   : > { %4479 = vst [vmem:[#allocation90_spill] sm:$0xff] %v3397_v21  ;;  %v3401_v36 = vmul.f32 %v3033_v62, %v3397_v21 }
 0x2d6   : > { %4478 = vst [vmem:[#allocation89_spill] sm:$0xff] %v3395_v41 }
 0x2d7   : > { %4480 = vst [vmem:[#allocation91_spill] sm:$0xff] %v3401_v36  ;;  %v1013_v37 = vmax.f32 %v3395_v41, %v3401_v36 }
 0x2d9   : > { %1014 = vmax.xlane.f32.xlu1 %v1013_v37 }
 0x2db   : > { %v3405_v10 = vpop.xlane.xlu1 %966  ;;  %v3407_v35 = vpop.xlane.xlu2 %972 }
 0x2dc   : > { %v3409_v33 = vpop.f32.mrf.mxu2  ;;  %v3411_v11 = vpop.f32.mrf.mxu3 }
 0x2dd   : > { %v3415_v38 = vmul.f32 %v3031_v61, %v3409_v33  ;;  %v3419_v60 = vmul.f32 %v3033_v62, %v3411_v11 }
 0x2df   : > { %4481 = vst [vmem:[#allocation92_spill] sm:$0xff] %v3415_v38  ;;  %v1016_v36 = vmax.f32 %v3415_v38, %v3419_v60 }
 0x2e0   : > { %4482 = vst [vmem:[#allocation93_spill] sm:$0xff] %v3419_v60 }
 0x2e1   : > { %1017 = vmax.xlane.f32.xlu2 %v1016_v36 }
 0x2e3   : > { %v3423_v37 = vpop.xlane.xlu1 %960  ;;  %v3425_v41 = vpop.xlane.xlu2 %963 }
 0x2e4   : > { %v3427_v3 = vpop.f32.mrf.mxu2  ;;  %v3429_v31 = vpop.f32.mrf.mxu3 }
 0x2e5   : > { %v3433_v30 = vmul.f32 %v3031_v61, %v3427_v3  ;;  %v3437_v21 = vmul.f32 %v3033_v62, %v3429_v31 }
 0x2e7   : > { %4483 = vst [vmem:[#allocation94_spill] sm:$0xff] %v3433_v30  ;;  %v1019_v60 = vmax.f32 %v3433_v30, %v3437_v21  ;;  %v3463_v30 = vmul.f32 %v3207_v39, %v3037_v0  ;;  %v3483_v0 = vmul.f32 %v3205_v22, %v3057_v6 }
 0x2e8   : > { %4484 = vst [vmem:[#allocation95_spill] sm:$0xff] %v3437_v21 }
 0x2e9   : > { %1020 = vmax.xlane.f32.xlu1 %v1019_v60  ;;  %v3459_v60 = vmul.f32 %v3205_v22, %v3035_v63  ;;  %4489 = vst [vmem:[#allocation100_spill] sm:$0xff] %v3463_v30 }
 0x2ea   : > { %4492 = vst [vmem:[#allocation103_spill] sm:$0xff] %v3483_v0 }
 0x2eb   : > { %v3441_v36 = vpop.xlane.xlu1 %954  ;;  %v3443_v38 = vpop.xlane.xlu2 %957  ;;  %4488 = vst [vmem:[#allocation99_spill] sm:$0xff] %v3459_v60 }
 0x2ec   : > { %4485 = vst [vmem:[#allocation96_spill] sm:$0xff] %v3443_v38  ;;  %v766_v44 = vpop.f32.mrf.mxu2  ;;  %v855_v29 = vpop.f32.mrf.mxu3 }
 0x2ed   : > { %v3446_v40 = vmul.f32 %v3031_v61, %v766_v44  ;;  %v3449_v34 = vmul.f32 %v3033_v62, %v855_v29 }
 0x2ef   : > { %4486 = vst [vmem:[#allocation97_spill] sm:$0xff] %v3446_v40  ;;  %v1022_v25 = vmax.f32 %v3446_v40, %v3449_v34  ;;  %v1468_v40 = vmax.f32 %v3459_v60, %v3463_v30  ;;  %v1053_v30 = vsub.f32 %v3045_v2, %v3389_v32  ;;  %v3527_v2 = vmul.f32 %v3207_v39, %v855_v29 }
 0x2f0   : > { %4487 = vst [vmem:[#allocation98_spill] sm:$0xff] %v3449_v34  ;;  %v1055_v60 = vsub.f32 %v3067_v9, %v3407_v35  ;;  %v3547_v9 = vmul.f32 %v3207_v39, %v3005_v53  ;;  %v1046_v53 = vsub.f32 %v3085_v15, %v3423_v37 }
 0x2f1   : > { %1023 = vmax.xlane.f32.xlu2 %v1022_v25  ;;  %4497 = vst [vmem:[#allocation108_spill] sm:$0xff] %v3527_v2 }
 0x2f3   : > { %v3453_v24 = vpop.xlane.xlu1 %948  ;;  %v3455_v21 = vpop.xlane.xlu2 %951 }
 0x2f4   : > { %v3465_v38 = vpop.f32.mrf.mxu2  ;;  %v3467_v28 = vpop.f32.mrf.mxu3 }
 0x2f5   : > { %4490 = vst [vmem:[#allocation101_spill] sm:$0xff] %v3465_v38  ;;  %v3471_v34 = vmul.f32 %v3031_v61, %v3465_v38  ;;  %v3475_v25 = vmul.f32 %v3033_v62, %v3467_v28  ;;  %v3487_v61 = vmul.f32 %v3207_v39, %v3059_v7  ;;  %v1052_v7 = vsub.f32 %v3041_v1, %v3389_v32 }
 0x2f6   : > { %v3524_v1 = vmul.f32 %v3205_v22, %v766_v44 }
 0x2f7   : > { %4491 = vst [vmem:[#allocation102_spill] sm:$0xff] %v3475_v25  ;;  %v1025_v63 = vmax.f32 %v3471_v34, %v3475_v25  ;;  %v3495_v25 = vmul.f32 %v3205_v22, %v3014_v56  ;;  %v1471_v6 = vmax.f32 %v3483_v0, %v3487_v61  ;;  %v3511_v56 = vmul.f32 %v3205_v22, %v3021_v58 }
 0x2f8   : > { %4493 = vst [vmem:[#allocation104_spill] sm:$0xff] %v3487_v61  ;;  %v1050_v61 = vsub.f32 %v3051_v4, %v3405_v10  ;;  %v1140_v32 = vmul.f32 1.442695, %v1052_v7  ;;  %v1051_v58 = vsub.f32 %v3055_v5, %v3405_v10  ;;  %v1522_v29 = vmax.f32 %v3524_v1, %v3527_v2 }
 0x2f9   : > { %1026 = vmax.xlane.f32.xlu1 %v1025_v63  ;;  %1469 = vmax.xlane.f32.xlu2 %v1468_v40  ;;  %4494 = vst [vmem:[#allocation105_spill] sm:$0xff] %v3495_v25  ;;  %v3499_v63 = vmul.f32 %v3207_v39, %v3016_v57  ;;  %v3515_v57 = vmul.f32 %v3207_v39, %v3023_v59  ;;  %v1142_v59 = vmul.f32 1.442695, %v1053_v30 }
 0x2fa   : > { %4496 = vst [vmem:[#allocation107_spill] sm:$0xff] %v3524_v1  ;;  %v1136_v4 = vmul.f32 1.442695, %v1050_v61  ;;  %2316 = vpow2.f32 %v1140_v32  ;;  %v1138_v7 = vmul.f32 1.442695, %v1051_v58 }
 0x2fb   : > { %v3489_v38 = vpop.xlane.xlu1 %942  ;;  %v3491_v62 = vpop.xlane.xlu2 %945  ;;  %4495 = vst [vmem:[#allocation106_spill] sm:$0xff] %v3499_v63  ;;  %v1462_v40 = vmax.f32 %v3495_v25, %v3499_v63  ;;  %v1465_v44 = vmax.f32 %v3511_v56, %v3515_v57  ;;  %2318 = vpow2.f32 %v1142_v59 }
 0x2fc   : > { %2320 = vpow2.f32 %v1136_v4  ;;  %v3579_v4 = vmul.f32 %v3205_v22, %v3409_v33 }
 0x2fd   : > { %2322 = vpow2.f32 %v1138_v7  ;;  %v3589_v7 = vmul.f32 %v3205_v22, %v3427_v3  ;;  %v1049_v3 = vsub.f32 %v3081_v14, %v3425_v41 }
 0x300   : > { %v3565_v59 = vpop.eup %2316 }
 0x301   : > { %1472 = vmax.xlane.f32.xlu1 %v1471_v6  ;;  %1463 = vmax.xlane.f32.xlu2 %v1462_v40  ;;  %v976_v6 = vpop.xlane.xlu0 %975  ;;  %v1054_v40 = vsub.f32 %v3063_v8, %v3407_v35  ;;  %v3543_v8 = vmul.f32 %v3205_v22, %v3003_v52  ;;  %v3557_v52 = vmul.f32 %v3207_v39, %v3009_v55 }
 0x302   : > { %v1056_v0 = vsub.f32 %v3097_v19, %v976_v6  ;;  %v1057_v5 = vsub.f32 %v3101_v20, %v976_v6  ;;  %v1146_v19 = vmul.f32 1.442695, %v1055_v60  ;;  %v3553_v20 = vmul.f32 %v3205_v22, %v3007_v54 }
 0x303   : > { %v3519_v63 = vpop.xlane.xlu1 %936  ;;  %v3521_v25 = vpop.xlane.xlu2 %939  ;;  %v1144_v30 = vmul.f32 1.442695, %v1054_v40  ;;  %v1047_v60 = vsub.f32 %v3089_v16, %v3423_v37  ;;  %v1048_v55 = vsub.f32 %v3077_v13, %v3425_v41  ;;  %v1456_v16 = vmax.f32 %v3543_v8, %v3547_v9 }
 0x304   : > { %v1148_v61 = vmul.f32 1.442695, %v1056_v0  ;;  %v1150_v6 = vmul.f32 1.442695, %v1057_v5  ;;  %v1459_v15 = vmax.f32 %v3553_v20, %v3557_v52  ;;  %v3583_v13 = vmul.f32 %v3207_v39, %v3411_v11 }
 0x305   : > { %2324 = vpow2.f32 %v1144_v30  ;;  %v1130_v0 = vmul.f32 1.442695, %v1047_v60  ;;  %v3593_v5 = vmul.f32 %v3207_v39, %v3429_v31  ;;  %v1134_v41 = vmul.f32 1.442695, %v1049_v3  ;;  %v4498_v3 = vld [vmem:[#allocation57_spill] sm:$0xff] }
 0x306   : > { %2326 = vpow2.f32 %v1146_v19  ;;  %v1516_v14 = vmax.f32 %v3579_v4, %v3583_v13 }
 0x307   : > { %2328 = vpow2.f32 %v1148_v61 }
 0x308   : > { %2330 = vpow2.f32 %v1150_v6 }
 0x309   : > { %1466 = vmax.xlane.f32.xlu1 %v1465_v44  ;;  %1523 = vmax.xlane.f32.xlu2 %v1522_v29  ;;  %v1132_v29 = vmul.f32 1.442695, %v1048_v55  ;;  %v1519_v55 = vmax.f32 %v3589_v7, %v3593_v5 }
 0x30b   : > { %v3549_v10 = vpop.xlane.xlu2 %933  ;;  %v979_v35 = vpop.xlane.xlu1 %978 }
 0x30c   : > { %v1058_v32 = vsub.f32 %v3218_v47, %v979_v35  ;;  %v1059_v58 = vsub.f32 %v3221_v23, %v979_v35  ;;  %v3571_v47 = vpop.eup %2318  ;;  %v1128_v23 = vmul.f32 1.442695, %v1046_v53 }
 0x30d   : > { %v3575_v37 = vpop.eup %2320 }
 0x30e   : > { %v1152_v54 = vmul.f32 1.442695, %v1058_v32  ;;  %v1154_v40 = vmul.f32 1.442695, %v1059_v58  ;;  %v3585_v44 = vpop.eup %2322  ;;  %v1042_v58 = vsub.f32 %v3119_v26, %v3441_v36  ;;  %v3615_v26 = vmul.f32 %v3205_v22, %v2993_v48 }
 0x30f   : > { %v3595_v19 = vpop.eup %2324 }
 0x310   : > { %2332 = vpow2.f32 %v1152_v54  ;;  %v3600_v61 = vpop.eup %2326 }
 0x311   : > { %1460 = vmax.xlane.f32.xlu1 %v1459_v15  ;;  %1457 = vmax.xlane.f32.xlu2 %v1456_v16  ;;  %2334 = vpow2.f32 %v1154_v40  ;;  %v2329_v32 = vpop.eup %2328 }
 0x312   : > { %2336 = vpow2.f32 %v1128_v23 }
 0x313   : > { %v1476_v33 = vpop.xlane.xlu2 %1475  ;;  %v1479_v30 = vpop.xlane.xlu1 %1478  ;;  %2338 = vpow2.f32 %v1130_v0 }
 0x314   : > { %v1556_v11 = vsub.f32 %v3237_v42, %v1476_v33  ;;  %v1557_v35 = vsub.f32 %v3241_v46, %v1476_v33  ;;  %v1558_v53 = vsub.f32 %v3244_v45, %v1479_v30  ;;  %v1559_v31 = vsub.f32 %v3247_v12, %v1479_v30  ;;  %v2331_v42 = vpop.eup %2330 }
 0x315   : > { %2340 = vpow2.f32 %v1132_v29  ;;  %v1043_v45 = vsub.f32 %v3123_v27, %v3441_v36  ;;  %v3621_v27 = vmul.f32 %v3207_v39, %v2995_v49  ;;  %v1120_v36 = vmul.f32 1.442695, %v1042_v58  ;;  %v4499_v58 = vld [vmem:[#allocation96_spill] sm:$0xff] }
 0x316   : > { %v1648_v60 = vmul.f32 1.442695, %v1556_v11  ;;  %v1650_v6 = vmul.f32 1.442695, %v1557_v35  ;;  %v1652_v54 = vmul.f32 1.442695, %v1558_v53  ;;  %v2333_v40 = vpop.eup %2332  ;;  %v3627_v30 = vmul.f32 %v3205_v22, %v2997_v50 }
 0x317   : > { %v1654_v46 = vmul.f32 1.442695, %v1559_v31  ;;  %v2335_v12 = vpop.eup %2334  ;;  %v1234_v15 = vpack.c.bf16 %v2333_v40, %v2329_v32  ;;  %v1122_v29 = vmul.f32 1.442695, %v1043_v45  ;;  %v3631_v11 = vmul.f32 %v3207_v39, %v2999_v51 }
 0x318   : > { %2342 = vpow2.f32 %v1648_v60  ;;  %v3617_v23 = vpop.eup %2336  ;;  %v1235_v16 = vpack.c.bf16 %v2335_v12, %v2331_v42  ;;  %v4500_v60 = vld [vmem:[#allocation31_spill] sm:$0xff]  ;;  %v4503_v12 = vld [vmem:[#allocation84_spill] sm:$0xff] }
 0x319   : > { %2344 = vpow2.f32 %v1650_v6  ;;  %1520 = vmax.xlane.f32.xlu1 %v1519_v55  ;;  %1517 = vmax.xlane.f32.xlu2 %v1516_v14  ;;  %v3623_v0 = vpop.eup %2338  ;;  %v1044_v50 = vsub.f32 %v4500_v60, %v4499_v58  ;;  %v4501_v6 = vld [vmem:[#allocation32_spill] sm:$0xff]  ;;  %v1453_v40 = vmax.f32 %v3627_v30, %v3631_v11 }
 0x31a   : > { %2346 = vpow2.f32 %v1652_v54  ;;  %1262 = vmatpush.bf16.xpose.msrb.mxu0 %v1234_v15  ;;  %1276 = vmatpush.bf16.xpose.msrb.mxu1 %v1235_v16  ;;  %v1045_v54 = vsub.f32 %v4501_v6, %v4499_v58  ;;  %v4505_v15 = vld [vmem:[#allocation85_spill] sm:$0xff]  ;;  %v1450_v16 = vmax.f32 %v3615_v26, %v3621_v27  ;;  %v4507_v58 = vld [vmem:[#allocation88_spill] sm:$0xff] }
 0x31b   : > { %2348 = vpow2.f32 %v1654_v46  ;;  %v982_v48 = vpop.xlane.xlu2 %981  ;;  %v985_v33 = vpop.xlane.xlu1 %984  ;;  %v3675_v60 = vmul.f32 %v3205_v22, %v4507_v58 }
 0x31c   : > { %v1060_v49 = vsub.f32 %v3259_v43, %v982_v48  ;;  %v1061_v35 = vsub.f32 %v3263_v17, %v982_v48  ;;  %v1062_v53 = vsub.f32 %v3267_v18, %v985_v33  ;;  %v1063_v31 = vsub.f32 %v4498_v3, %v985_v33  ;;  %v3637_v32 = vpop.eup %2340  ;;  %v4502_v18 = vld [vmem:[#allocation35_spill] sm:$0xff] }
 0x31d   : > { %2350 = vpow2.f32 %v1134_v41  ;;  %v1038_v46 = vsub.f32 %v4502_v18, %v3453_v24  ;;  %v3655_v41 = vmul.f32 %v3205_v22, %v4503_v12  ;;  %v1124_v48 = vmul.f32 1.442695, %v1044_v50  ;;  %4508 = vst [vmem:[#allocation31_spill] sm:$0xff] %v3675_v60  ;;  %v4509_v50 = vld [vmem:[#allocation90_spill] sm:$0xff]  ;;  %v4514_v12 = vld [vmem:[#allocation63_spill] sm:$0xff] }
 0x31e   : > { %v3643_v51 = vpop.eup %2342  ;;  %2352 = vpow2.f32 %v1120_v36  ;;  %v1156_v42 = vmul.f32 1.442695, %v1060_v49  ;;  %v1158_v43 = vmul.f32 1.442695, %v1061_v35  ;;  %v1160_v45 = vmul.f32 1.442695, %v1062_v53 }
 0x31f   : > { %v3645_v17 = vpop.eup %2344  ;;  %2354 = vpow2.f32 %v1122_v29  ;;  %v1162_v55 = vmul.f32 1.442695, %v1063_v31  ;;  %4504 = vst [vmem:[#allocation57_spill] sm:$0xff] %v3655_v41  ;;  %v3659_v36 = vmul.f32 %v3207_v39, %v4505_v15  ;;  %v1232_v33 = vpack.c.bf16 %v3595_v19, %v3565_v59  ;;  %v4513_v18 = vld [vmem:[#allocation62_spill] sm:$0xff]  ;;  %v4525_v49 = vld [vmem:[#allocation68_spill] sm:$0xff] }
 0x320   : > { %v3651_v14 = vpop.eup %2346  ;;  %2356 = vpow2.f32 %v1156_v42  ;;  %v1126_v35 = vmul.f32 1.442695, %v1045_v54  ;;  %v1233_v53 = vpack.c.bf16 %v3600_v61, %v3571_v47  ;;  %v3679_v59 = vmul.f32 %v3207_v39, %v4509_v50  ;;  %v4511_v47 = vld [vmem:[#allocation60_spill] sm:$0xff] }
 0x321   : > { %4506 = vst [vmem:[#allocation96_spill] sm:$0xff] %v3659_v36  ;;  %v3663_v29 = vpop.eup %2348  ;;  %2358 = vpow2.f32 %v1158_v43  ;;  %1454 = vmax.xlane.f32.xlu1 %v1453_v40  ;;  %1451 = vmax.xlane.f32.xlu2 %v1450_v16  ;;  %v1112_v19 = vmul.f32 1.442695, %v1038_v46  ;;  %v4512_v43 = vld [vmem:[#allocation61_spill] sm:$0xff] }
 0x322   : > { %2360 = vpow2.f32 %v1160_v45  ;;  %4510 = vst [vmem:[#allocation32_spill] sm:$0xff] %v3679_v59  ;;  %1263 = vmatpush.bf16.xpose.msrb.mxu0 %v1232_v33  ;;  %1277 = vmatpush.bf16.xpose.msrb.mxu1 %v1233_v53  ;;  %v4515_v46 = vld [vmem:[#allocation33_spill] sm:$0xff] }
 0x323   : > { %v2351_v31 = vpop.eup %2350  ;;  %2362 = vpow2.f32 %v1162_v55  ;;  %v988_v6 = vpop.xlane.xlu2 %987  ;;  %v1040_v55 = vsub.f32 %v4515_v46, %v3455_v21 }
 0x324   : > { %v991_v54 = vpop.xlane.xlu1 %990  ;;  %v3681_v42 = vpop.eup %2352  ;;  %v1064_v61 = vsub.f32 %v4511_v47, %v988_v6  ;;  %v1065_v45 = vsub.f32 %v4512_v43, %v988_v6  ;;  %2364 = vpow2.f32 %v1124_v48  ;;  %v4516_v6 = vld [vmem:[#allocation34_spill] sm:$0xff]  ;;  %v1231_v46 = vpack.c.bf16 %v3585_v44, %v2351_v31 }
 0x325   : > { %v1066_v40 = vsub.f32 %v4513_v18, %v991_v54  ;;  %v1067_v15 = vsub.f32 %v4514_v12, %v991_v54  ;;  %v3687_v16 = vpop.eup %2354  ;;  %2366 = vpow2.f32 %v1126_v35  ;;  %v1041_v47 = vsub.f32 %v4516_v6, %v3455_v21  ;;  %v4517_v18 = vld [vmem:[#allocation27_spill] sm:$0xff]  ;;  %v4523_v44 = vld [vmem:[#allocation66_spill] sm:$0xff] }
 0x326   : > { %v3691_v33 = vpop.eup %2356  ;;  %v1164_v58 = vmul.f32 1.442695, %v1064_v61  ;;  %v1166_v50 = vmul.f32 1.442695, %v1065_v45  ;;  %2368 = vpow2.f32 %v1112_v19  ;;  %v1513_v54 = vmax.f32 %v3675_v60, %v3679_v59  ;;  %v4527_v59 = vld [vmem:[#allocation36_spill] sm:$0xff] }
 0x327   : > { %v1168_v53 = vmul.f32 1.442695, %v1066_v40  ;;  %v3693_v3 = vpop.eup %2358  ;;  %v1170_v43 = vmul.f32 1.442695, %v1067_v15  ;;  %v3703_v12 = vmul.f32 %v3205_v22, %v4517_v18  ;;  %v1510_v35 = vmax.f32 %v3655_v41, %v3659_v36  ;;  %v4518_v40 = vld [vmem:[#allocation28_spill] sm:$0xff]  ;;  %v4521_v18 = vld [vmem:[#allocation30_spill] sm:$0xff] }
 0x328   : > { %v3699_v48 = vpop.eup %2360  ;;  %2370 = vpow2.f32 %v1164_v58  ;;  %v1116_v19 = vmul.f32 1.442695, %v1040_v55  ;;  %v1230_v21 = vpack.c.bf16 %v3575_v37, %v3637_v32  ;;  %v3715_v15 = vmul.f32 %v3207_v39, %v4518_v40  ;;  %v4520_v32 = vld [vmem:[#allocation29_spill] sm:$0xff] }
 0x329   : > { %v3707_v61 = vpop.eup %2362  ;;  %2372 = vpow2.f32 %v1166_v50  ;;  %1514 = vmax.xlane.f32.xlu1 %v1513_v54  ;;  %1511 = vmax.xlane.f32.xlu2 %v1510_v35  ;;  %v1118_v50 = vmul.f32 1.442695, %v1041_v47  ;;  %v3722_v54 = vmul.f32 %v3205_v22, %v4520_v32  ;;  %v3726_v40 = vmul.f32 %v3207_v39, %v4521_v18  ;;  %v4524_v35 = vld [vmem:[#allocation67_spill] sm:$0xff] }
 0x32a   : > { %4519 = vst [vmem:[#allocation35_spill] sm:$0xff] %v3715_v15  ;;  %2374 = vpow2.f32 %v1168_v53  ;;  %v2365_v55 = vpop.eup %2364  ;;  %1264 = vmatpush.bf16.xpose.msrb.mxu0 %v1230_v21  ;;  %1278 = vmatpush.bf16.xpose.msrb.mxu1 %v1231_v46  ;;  %v1039_v32 = vsub.f32 %v4527_v59, %v3453_v24  ;;  %v4528_v18 = vld [vmem:[#allocation39_spill] sm:$0xff]  ;;  %v4530_v59 = vld [vmem:[#allocation76_spill] sm:$0xff] }
 0x32b   : > { %2376 = vpow2.f32 %v1170_v43  ;;  %v994_v6 = vpop.xlane.xlu2 %993  ;;  %4522 = vst [vmem:[#allocation84_spill] sm:$0xff] %v3726_v40  ;;  %v2367_v53 = vpop.eup %2366  ;;  %v4526_v43 = vld [vmem:[#allocation69_spill] sm:$0xff]  ;;  %v1036_v41 = vsub.f32 %v4528_v18, %v3491_v62 }
 0x32c   : > { %v997_v37 = vpop.xlane.xlu1 %996  ;;  %v1068_v31 = vsub.f32 %v4523_v44, %v994_v6  ;;  %v1069_v58 = vsub.f32 %v4524_v35, %v994_v6  ;;  %v3732_v45 = vpop.eup %2368  ;;  %2378 = vpow2.f32 %v1116_v19  ;;  %v1447_v35 = vmax.f32 %v3722_v54, %v3726_v40 }
 0x32d   : > { %v1070_v47 = vsub.f32 %v4525_v49, %v997_v37  ;;  %v1071_v21 = vsub.f32 %v4526_v43, %v997_v37  ;;  %2380 = vpow2.f32 %v1118_v50  ;;  %v4529_v49 = vld [vmem:[#allocation40_spill] sm:$0xff]  ;;  %v3750_v19 = vmul.f32 %v3205_v22, %v4530_v59  ;;  %v4532_v43 = vld [vmem:[#allocation77_spill] sm:$0xff] }
 0x32e   : > { %v3736_v36 = vpop.eup %2370  ;;  %v1172_v46 = vmul.f32 1.442695, %v1068_v31  ;;  %v1174_v60 = vmul.f32 1.442695, %v1069_v58  ;;  %v1037_v6 = vsub.f32 %v4529_v49, %v3491_v62  ;;  %v3754_v58 = vmul.f32 %v3207_v39, %v4532_v43  ;;  %v4534_v43 = vld [vmem:[#allocation101_spill] sm:$0xff] }
 0x32f   : > { %v1176_v44 = vmul.f32 1.442695, %v1070_v47  ;;  %v3740_v2 = vpop.eup %2372  ;;  %v1178_v37 = vmul.f32 1.442695, %v1071_v21  ;;  %4531 = vst [vmem:[#allocation85_spill] sm:$0xff] %v3750_v19  ;;  %v1444_v50 = vmax.f32 %v3703_v12, %v3715_v15  ;;  %v1228_v47 = vpack.c.bf16 %v3617_v23, %v2365_v55  ;;  %v4612_v15 = vld [vmem:[#allocation83_spill] sm:$0xff] }
 0x330   : > { %v3746_v24 = vpop.eup %2374  ;;  %4533 = vst [vmem:[#allocation88_spill] sm:$0xff] %v3754_v58  ;;  %2382 = vpow2.f32 %v1172_v46  ;;  %v1114_v62 = vmul.f32 1.442695, %v1039_v32  ;;  %v1108_v18 = vmul.f32 1.442695, %v1036_v41  ;;  %v1229_v49 = vpack.c.bf16 %v3623_v0, %v2367_v53  ;;  %v4537_v32 = vld [vmem:[#allocation72_spill] sm:$0xff] }
 0x331   : > { %v3758_v31 = vpop.eup %2376  ;;  %2384 = vpow2.f32 %v1174_v60  ;;  %1448 = vmax.xlane.f32.xlu1 %v1447_v35  ;;  %1445 = vmax.xlane.f32.xlu2 %v1444_v50  ;;  %v3768_v1 = vmul.f32 %v3205_v22, %v4534_v43  ;;  %v3772_v60 = vmul.f32 %v3207_v39, %v3467_v28  ;;  %v1110_v23 = vmul.f32 1.442695, %v1037_v6  ;;  %v4538_v53 = vld [vmem:[#allocation73_spill] sm:$0xff]  ;;  %v4539_v35 = vld [vmem:[#allocation74_spill] sm:$0xff]  ;;  %v4540_v46 = vld [vmem:[#allocation75_spill] sm:$0xff] }
 0x332   : > { %2386 = vpow2.f32 %v1176_v44  ;;  %v2379_v59 = vpop.eup %2378  ;;  %1265 = vmatpush.bf16.xpose.msrb.mxu0 %v1228_v47  ;;  %1279 = vmatpush.bf16.xpose.msrb.mxu1 %v1229_v49 }
 0x333   : > { %4535 = vst [vmem:[#allocation90_spill] sm:$0xff] %v3768_v1  ;;  %2388 = vpow2.f32 %v1178_v37  ;;  %v1000_v41 = vpop.xlane.xlu2 %999  ;;  %v2381_v43 = vpop.eup %2380 }
 0x334   : > { %4536 = vst [vmem:[#allocation60_spill] sm:$0xff] %v3772_v60  ;;  %v1003_v55 = vpop.xlane.xlu1 %1002  ;;  %v1072_v0 = vsub.f32 %v4537_v32, %v1000_v41  ;;  %v1073_v44 = vsub.f32 %v4538_v53, %v1000_v41  ;;  %2390 = vpow2.f32 %v1114_v62  ;;  %v1525_v32 = vmax.f32 %v3768_v1, %v3772_v60  ;;  %v4541_v53 = vld [vmem:[#allocation45_spill] sm:$0xff] }
 0x335   : > { %v1074_v50 = vsub.f32 %v4539_v35, %v1003_v55  ;;  %v1075_v21 = vsub.f32 %v4540_v46, %v1003_v55  ;;  %2392 = vpow2.f32 %v1108_v18  ;;  %v1032_v46 = vsub.f32 %v4541_v53, %v3521_v25  ;;  %v4542_v55 = vld [vmem:[#allocation46_spill] sm:$0xff] }
 0x336   : > { %v3778_v40 = vpop.eup %2382  ;;  %v1180_v28 = vmul.f32 1.442695, %v1072_v0  ;;  %v1182_v6 = vmul.f32 1.442695, %v1073_v44  ;;  %2394 = vpow2.f32 %v1110_v23  ;;  %v1504_v62 = vmax.f32 %v3750_v19, %v3754_v58  ;;  %v4543_v44 = vld [vmem:[#allocation41_spill] sm:$0xff]  ;;  %v4544_v58 = vld [vmem:[#allocation80_spill] sm:$0xff] }
 0x337   : > { %v1184_v37 = vmul.f32 1.442695, %v1074_v50  ;;  %v3780_v47 = vpop.eup %2384  ;;  %v1186_v49 = vmul.f32 1.442695, %v1075_v21  ;;  %v1033_v0 = vsub.f32 %v4542_v55, %v3521_v25  ;;  %v1226_v21 = vpack.c.bf16 %v3681_v42, %v2379_v59  ;;  %v4548_v59 = vld [vmem:[#allocation42_spill] sm:$0xff] }
 0x338   : > { %v3784_v41 = vpop.eup %2386  ;;  %2396 = vpow2.f32 %v1180_v28  ;;  %v1034_v35 = vsub.f32 %v4543_v44, %v3489_v38  ;;  %v1227_v50 = vpack.c.bf16 %v3687_v16, %v2381_v43  ;;  %v3804_v25 = vmul.f32 %v3205_v22, %v4544_v58  ;;  %v4551_v43 = vld [vmem:[#allocation24_spill] sm:$0xff] }
 0x339   : > { %v3790_v18 = vpop.eup %2388  ;;  %2398 = vpow2.f32 %v1182_v6  ;;  %1526 = vmax.xlane.f32.xlu1 %v1525_v32  ;;  %1505 = vmax.xlane.f32.xlu2 %v1504_v62  ;;  %v4546_v6 = vld [vmem:[#allocation81_spill] sm:$0xff]  ;;  %v1035_v32 = vsub.f32 %v4548_v59, %v3489_v38  ;;  %v4549_v62 = vld [vmem:[#allocation23_spill] sm:$0xff]  ;;  %v3818_v55 = vmul.f32 %v3207_v39, %v4551_v43  ;;  %v1100_v58 = vmul.f32 1.442695, %v1032_v46 }
 0x33a   : > { %2400 = vpow2.f32 %v1184_v37  ;;  %v2391_v53 = vpop.eup %2390  ;;  %4545 = vst [vmem:[#allocation61_spill] sm:$0xff] %v3804_v25  ;;  %v3808_v42 = vmul.f32 %v3207_v39, %v4546_v6  ;;  %1266 = vmatpush.bf16.xpose.msrb.mxu0 %v1226_v21  ;;  %v3814_v16 = vmul.f32 %v3205_v22, %v4549_v62  ;;  %1280 = vmatpush.bf16.xpose.msrb.mxu1 %v1227_v50  ;;  %v1102_v28 = vmul.f32 1.442695, %v1033_v0  ;;  %v4553_v59 = vld [vmem:[#allocation51_spill] sm:$0xff]  ;;  %v4554_v0 = vld [vmem:[#allocation52_spill] sm:$0xff] }
 0x33b   : > { %2402 = vpow2.f32 %v1186_v49  ;;  %v2393_v37 = vpop.eup %2392  ;;  %4552 = vst [vmem:[#allocation33_spill] sm:$0xff] %v3818_v55  ;;  %v1104_v23 = vmul.f32 1.442695, %v1034_v35  ;;  %v1106_v38 = vmul.f32 1.442695, %v1035_v32  ;;  %v1028_v62 = vsub.f32 %v4553_v59, %v3549_v10  ;;  %v4569_v43 = vld [vmem:[#allocation19_spill] sm:$0xff] }
 0x33c   : > { %4547 = vst [vmem:[#allocation62_spill] sm:$0xff] %v3808_v42  ;;  %v2395_v44 = vpop.eup %2394  ;;  %v1507_v49 = vmax.f32 %v3804_v25, %v3808_v42  ;;  %2404 = vpow2.f32 %v1100_v58  ;;  %v1438_v46 = vmax.f32 %v3814_v16, %v3818_v55  ;;  %v1029_v35 = vsub.f32 %v4554_v0, %v3549_v10  ;;  %v4555_v58 = vld [vmem:[#allocation47_spill] sm:$0xff]  ;;  %v4557_v10 = vld [vmem:[#allocation25_spill] sm:$0xff] }
 0x33d   : > { %4550 = vst [vmem:[#allocation63_spill] sm:$0xff] %v3814_v16  ;;  %2406 = vpow2.f32 %v1102_v28  ;;  %v1224_v32 = vpack.c.bf16 %v3732_v45, %v2393_v37  ;;  %v1030_v42 = vsub.f32 %v4555_v58, %v3519_v63  ;;  %v1225_v59 = vpack.c.bf16 %v2391_v53, %v2395_v44  ;;  %v4556_v28 = vld [vmem:[#allocation48_spill] sm:$0xff]  ;;  %v4559_v37 = vld [vmem:[#allocation26_spill] sm:$0xff]  ;;  %v4563_v53 = vld [vmem:[#allocation65_spill] sm:$0xff] }
 0x33e   : > { %v3820_v6 = vpop.eup %2396  ;;  %2408 = vpow2.f32 %v1104_v23  ;;  %v1031_v60 = vsub.f32 %v4556_v28, %v3519_v63  ;;  %v3847_v45 = vmul.f32 %v3205_v22, %v4557_v10  ;;  %v3851_v23 = vmul.f32 %v3207_v39, %v4559_v37 }
 0x33f   : > { %v3822_v19 = vpop.eup %2398  ;;  %2410 = vpow2.f32 %v1106_v38  ;;  %v3859_v44 = vmul.f32 %v3207_v39, %v4563_v53  ;;  %v1092_v38 = vmul.f32 1.442695, %v1028_v62  ;;  %v1094_v63 = vmul.f32 1.442695, %v1029_v35  ;;  %v4565_v35 = vld [vmem:[#allocation70_spill] sm:$0xff] }
 0x340   : > { %v3826_v21 = vpop.eup %2400  ;;  %4558 = vst [vmem:[#allocation34_spill] sm:$0xff] %v3847_v45  ;;  %v1098_v28 = vmul.f32 1.442695, %v1031_v60  ;;  %v1441_v10 = vmax.f32 %v3847_v45, %v3851_v23  ;;  %v4567_v60 = vld [vmem:[#allocation71_spill] sm:$0xff]  ;;  %v4601_v45 = vld [vmem:[#allocation92_spill] sm:$0xff] }
 0x341   : > { %v3832_v50 = vpop.eup %2402  ;;  %1508 = vmax.xlane.f32.xlu1 %v1507_v49  ;;  %1439 = vmax.xlane.f32.xlu2 %v1438_v46  ;;  %4560 = vst [vmem:[#allocation27_spill] sm:$0xff] %v3851_v23  ;;  %v4561_v49 = vld [vmem:[#allocation64_spill] sm:$0xff]  ;;  %2412 = vpow2.f32 %v1092_v38  ;;  %v3873_v38 = vpop.xlane.xlu2 %1005  ;;  %v4600_v23 = vld [vmem:[#allocation94_spill] sm:$0xff] }
 0x342   : > { %1267 = vmatpush.bf16.xpose.msrb.mxu0 %v1224_v32  ;;  %v3855_v46 = vmul.f32 %v3205_v22, %v4561_v49  ;;  %4564 = vst [vmem:[#allocation29_spill] sm:$0xff] %v3859_v44  ;;  %1281 = vmatpush.bf16.xpose.msrb.mxu1 %v1225_v59  ;;  %v2405_v0 = vpop.eup %2404  ;;  %v1096_v32 = vmul.f32 1.442695, %v1030_v42  ;;  %2414 = vpow2.f32 %v1094_v63  ;;  %v3867_v42 = vmul.f32 %v3205_v22, %v4565_v35  ;;  %v4573_v35 = vld [vmem:[#allocation21_spill] sm:$0xff] }
 0x343   : > { %v2407_v58 = vpop.eup %2406  ;;  %v3871_v59 = vmul.f32 %v3207_v39, %v4567_v60  ;;  %v3877_v63 = vmul.f32 %v3205_v22, %v4569_v43  ;;  %v3889_v60 = vmul.f32 %v3205_v22, %v4573_v35  ;;  %v4587_v35 = vld [vmem:[#allocation50_spill] sm:$0xff] }
 0x344   : > { %4562 = vst [vmem:[#allocation28_spill] sm:$0xff] %v3855_v46  ;;  %v2409_v37 = vpop.eup %2408  ;;  %v1498_v49 = vmax.f32 %v3855_v46, %v3859_v44  ;;  %2416 = vpow2.f32 %v1096_v32  ;;  %v4577_v44 = vld [vmem:[#allocation55_spill] sm:$0xff]  ;;  %v4579_v46 = vld [vmem:[#allocation56_spill] sm:$0xff] }
 0x345   : > { %v2411_v25 = vpop.eup %2410  ;;  %v1222_v53 = vpack.c.bf16 %v2409_v37, %v2405_v0  ;;  %4566 = vst [vmem:[#allocation30_spill] sm:$0xff] %v3867_v42  ;;  %2418 = vpow2.f32 %v1098_v28  ;;  %v4571_v0 = vld [vmem:[#allocation20_spill] sm:$0xff] }
 0x346   : > { %v1223_v62 = vpack.c.bf16 %v2411_v25, %v2407_v58  ;;  %4568 = vst [vmem:[#allocation66_spill] sm:$0xff] %v3871_v59  ;;  %v3881_v32 = vmul.f32 %v3207_v39, %v4571_v0 }
 0x347   : > { %4570 = vst [vmem:[#allocation67_spill] sm:$0xff] %v3877_v63  ;;  %v2413_v25 = vpop.eup %2412 }
 0x348   : > { %4572 = vst [vmem:[#allocation68_spill] sm:$0xff] %v3881_v32  ;;  %v2415_v58 = vpop.eup %2414  ;;  %v1432_v28 = vmax.f32 %v3877_v63, %v3881_v32  ;;  %v4595_v63 = vld [vmem:[#allocation44_spill] sm:$0xff] }
 0x349   : > { %1442 = vmax.xlane.f32.xlu1 %v1441_v10  ;;  %1499 = vmax.xlane.f32.xlu2 %v1498_v49  ;;  %v1501_v10 = vmax.f32 %v3867_v42, %v3871_v59  ;;  %4574 = vst [vmem:[#allocation69_spill] sm:$0xff] %v3889_v60  ;;  %v3897_v59 = vmul.f32 %v3205_v22, %v4577_v44 }
 0x34a   : > { %1268 = vmatpush.bf16.xpose.msrb.mxu0 %v1222_v53  ;;  %1282 = vmatpush.bf16.xpose.msrb.mxu1 %v1223_v62  ;;  %v2417_v37 = vpop.eup %2416  ;;  %v4575_v62 = vld [vmem:[#allocation22_spill] sm:$0xff]  ;;  %v3901_v42 = vmul.f32 %v3207_v39, %v4579_v46 }
 0x34b   : > { %v2419_v49 = vpop.eup %2418  ;;  %v1220_v53 = vpack.c.bf16 %v2417_v37, %v2413_v25  ;;  %v3893_v0 = vmul.f32 %v3207_v39, %v4575_v62  ;;  %4578 = vst [vmem:[#allocation39_spill] sm:$0xff] %v3897_v59  ;;  %v3903_v25 = vpop.xlane.xlu1 %1008  ;;  %v3925_v62 = vmul.f32 %v3207_v39, %v4587_v35  ;;  %v4593_v35 = vld [vmem:[#allocation43_spill] sm:$0xff] }
 0x34c   : > { %v1221_v43 = vpack.c.bf16 %v2419_v49, %v2415_v58  ;;  %4580 = vst [vmem:[#allocation40_spill] sm:$0xff] %v3901_v42  ;;  %v3905_v58 = vpop.xlane.xlu2 %1011  ;;  %v1492_v37 = vmax.f32 %v3897_v59, %v3901_v42  ;;  %v4583_v49 = vld [vmem:[#allocation59_spill] sm:$0xff] }
 0x34d   : > { %4576 = vst [vmem:[#allocation36_spill] sm:$0xff] %v3893_v0  ;;  %v3917_v46 = vmul.f32 %v3207_v39, %v4583_v49  ;;  %v4589_v49 = vld [vmem:[#allocation37_spill] sm:$0xff] }
 0x34e   : > { %4588 = vst [vmem:[#allocation72_spill] sm:$0xff] %v3925_v62  ;;  %v3935_v42 = vmul.f32 %v3205_v22, %v4589_v49 }
 0x34f   : > { %4584 = vst [vmem:[#allocation77_spill] sm:$0xff] %v3917_v46 }
 0x350   : > { %4590 = vst [vmem:[#allocation73_spill] sm:$0xff] %v3935_v42 }
 0x351   : > { %1502 = vmax.xlane.f32.xlu1 %v1501_v10  ;;  %1433 = vmax.xlane.f32.xlu2 %v1432_v28  ;;  %v1435_v10 = vmax.f32 %v3889_v60, %v3893_v0  ;;  %v4581_v28 = vld [vmem:[#allocation58_spill] sm:$0xff]  ;;  %v3943_v0 = vmul.f32 %v3205_v22, %v4593_v35 }
 0x352   : > { %1269 = vmatpush.bf16.xpose.msrb.mxu0 %v1220_v53  ;;  %1283 = vmatpush.bf16.xpose.msrb.mxu1 %v1221_v43  ;;  %v3913_v44 = vmul.f32 %v3205_v22, %v4581_v28  ;;  %v4585_v53 = vld [vmem:[#allocation49_spill] sm:$0xff] }
 0x353   : > { %v3921_v43 = vmul.f32 %v3205_v22, %v4585_v53  ;;  %v3927_v32 = vpop.xlane.xlu1 %1014  ;;  %v4591_v53 = vld [vmem:[#allocation38_spill] sm:$0xff]  ;;  %4594 = vst [vmem:[#allocation75_spill] sm:$0xff] %v3943_v0 }
 0x354   : > { %4582 = vst [vmem:[#allocation76_spill] sm:$0xff] %v3913_v44  ;;  %v3939_v59 = vmul.f32 %v3207_v39, %v4591_v53  ;;  %v4598_v53 = vld [vmem:[#allocation98_spill] sm:$0xff] }
 0x355   : > { %4586 = vst [vmem:[#allocation101_spill] sm:$0xff] %v3921_v43  ;;  %v1486_v28 = vmax.f32 %v3921_v43, %v3925_v62 }
 0x356   : > { %4592 = vst [vmem:[#allocation74_spill] sm:$0xff] %v3939_v59 }
 0x359   : > { %1436 = vmax.xlane.f32.xlu1 %v1435_v10  ;;  %1493 = vmax.xlane.f32.xlu2 %v1492_v37  ;;  %v1018_v10 = vpop.xlane.xlu2 %1017  ;;  %v1495_v37 = vmax.f32 %v3913_v44, %v3917_v46  ;;  %v3947_v46 = vmul.f32 %v3207_v39, %v4595_v63  ;;  %v4599_v63 = vld [vmem:[#allocation102_spill] sm:$0xff] }
 0x35b   : > { %4596 = vst [vmem:[#allocation45_spill] sm:$0xff] %v3947_v46  ;;  %v1483_v43 = vmax.f32 %v3943_v0, %v3947_v46  ;;  %v1084_v46 = vsub.f32 %v4601_v45, %v1018_v10 }
 0x35c   : > { %v1021_v44 = vpop.xlane.xlu1 %1020 }
 0x35d   : > { %v1086_v16 = vsub.f32 %v4600_v23, %v1021_v44 }
 0x361   : > { %1496 = vmax.xlane.f32.xlu1 %v1495_v37  ;;  %1487 = vmax.xlane.f32.xlu2 %v1486_v28  ;;  %v1480_v37 = vmax.f32 %v3935_v42, %v3939_v59  ;;  %v4597_v28 = vld [vmem:[#allocation97_spill] sm:$0xff] }
 0x364   : > { %v1024_v62 = vpop.xlane.xlu2 %1023 }
 0x365   : > { %v1088_v49 = vsub.f32 %v4597_v28, %v1024_v62  ;;  %v1089_v1 = vsub.f32 %v4598_v53, %v1024_v62  ;;  %v1208_v62 = vmul.f32 1.442695, %v1086_v16 }
 0x367   : > { %v1212_v22 = vmul.f32 1.442695, %v1088_v49  ;;  %v1214_v59 = vmul.f32 1.442695, %v1089_v1  ;;  %v4603_v49 = vld [vmem:[#allocation93_spill] sm:$0xff] }
 0x368   : > { %v1085_v53 = vsub.f32 %v4603_v49, %v1018_v10  ;;  %v4607_v49 = vld [vmem:[#allocation87_spill] sm:$0xff] }
 0x369   : > { %1481 = vmax.xlane.f32.xlu1 %v1480_v37  ;;  %1484 = vmax.xlane.f32.xlu2 %v1483_v43  ;;  %2420 = vpow2.f32 %v1212_v22  ;;  %v4602_v43 = vld [vmem:[#allocation95_spill] sm:$0xff] }
 0x36a   : > { %v1087_v37 = vsub.f32 %v4602_v43, %v1021_v44 }
 0x36c   : > { %v1027_v35 = vpop.xlane.xlu1 %1026  ;;  %v3955_v60 = vpop.xlane.xlu2 %1469  ;;  %v1210_v23 = vmul.f32 1.442695, %v1087_v37 }
 0x36d   : > { %v1090_v39 = vsub.f32 %v3471_v34, %v1027_v35  ;;  %v1091_v55 = vsub.f32 %v4599_v63, %v1027_v35  ;;  %v1204_v35 = vmul.f32 1.442695, %v1084_v46  ;;  %v4606_v46 = vld [vmem:[#allocation91_spill] sm:$0xff] }
 0x36f   : > { %v1216_v42 = vmul.f32 1.442695, %v1090_v39  ;;  %v1218_v28 = vmul.f32 1.442695, %v1091_v55  ;;  %v2421_v1 = vpop.eup %2420  ;;  %v4604_v55 = vld [vmem:[#allocation89_spill] sm:$0xff] }
 0x370   : > { %v1082_v45 = vsub.f32 %v4604_v55, %v3927_v32  ;;  %v1081_v55 = vsub.f32 %v4607_v49, %v3905_v58  ;;  %v2236_v49 = vld [vmem:[%s461_s20 + $0x4] sm:$0xf] }
 0x371   : > { %2422 = vpow2.f32 %v1216_v42  ;;  %v1206_v42 = vmul.f32 1.442695, %v1085_v53 }
 0x372   : > { %2424 = vpow2.f32 %v1214_v59  ;;  %v4605_v59 = vld [vmem:[#allocation86_spill] sm:$0xff]  ;;  %v1200_v43 = vmul.f32 1.442695, %v1082_v45 }
 0x373   : > { %2426 = vpow2.f32 %v1218_v28  ;;  %v1080_v39 = vsub.f32 %v4605_v59, %v3905_v58  ;;  %v1083_v28 = vsub.f32 %v4606_v46, %v3927_v32 }
 0x374   : > { %v3963_v34 = vpop.xlane.xlu1 %1472  ;;  %v3965_v63 = vpop.xlane.xlu2 %1463  ;;  %2428 = vpow2.f32 %v1208_v62 }
 0x375   : > { %2430 = vpow2.f32 %v1204_v35  ;;  %v4609_v35 = vld [vmem:[#allocation78_spill] sm:$0xff]  ;;  %v1202_v0 = vmul.f32 1.442695, %v1083_v28 }
 0x376   : > { %2432 = vpow2.f32 %v1210_v23  ;;  %v1076_v59 = vsub.f32 %v4609_v35, %v3873_v38  ;;  %v4610_v23 = vld [vmem:[#allocation82_spill] sm:$0xff] }
 0x377   : > { %v2423_v22 = vpop.eup %2422  ;;  %2434 = vpow2.f32 %v1206_v42  ;;  %v1078_v45 = vsub.f32 %v4610_v23, %v3903_v25  ;;  %v1198_v42 = vmul.f32 1.442695, %v1081_v55  ;;  %v2220_v35 = vld [vmem:[%s461_s20 + $0x8] sm:$0xf0]  ;;  %v1079_v23 = vsub.f32 %v4612_v15, %v3903_v25 }
 0x378   : > { %v1250_v44 = vpack.c.bf16 %v2423_v22, %v2421_v1  ;;  %v2425_v16 = vpop.eup %2424  ;;  %v1196_v1 = vmul.f32 1.442695, %v1080_v39  ;;  %2436 = vpow2.f32 %v1200_v43  ;;  %v4611_v39 = vld [vmem:[#allocation79_spill] sm:$0xff]  ;;  %v3990_v43 = vor.u32 %v2236_v49, %v2220_v35 }
 0x379   : > { %v2427_v10 = vpop.eup %2426  ;;  %v1077_v46 = vsub.f32 %v4611_v39, %v3873_v38  ;;  %v1192_v55 = vmul.f32 1.442695, %v1078_v45  ;;  %v1194_v15 = vmul.f32 1.442695, %v1079_v23 }
 0x37a   : > { %1290 = vmatpush.bf16.xpose.msra.mxu0 %v1250_v44  ;;  %v1251_v37 = vpack.c.bf16 %v2427_v10, %v2425_v16  ;;  %v2429_v53 = vpop.eup %2428  ;;  %v2218_v44 = vld [vmem:[%s461_s20] sm:$0xf]  ;;  %v2237_v10 = vld [vmem:[%s461_s20 + $0x4] sm:$0xf0]  ;;  %2438 = vpow2.f32 %v1196_v1  ;;  %1284 = vmatmul.bf16.vlgmr.msrb.gmra.mxu1 %v3990_v43  ;;  %s1992_s20 = sshll.u32 %s524_s28, 4  ;;  %s1993_s20 = int_to_ptr.vmem [resolvable:$true] %s1992_s20 }
 0x37b   : > { %v2431_v32 = vpop.eup %2430  ;;  %2440 = vpow2.f32 %v1202_v0 }
 0x37c   : > { %v3976_v62 = vpop.xlane.xlu1 %1466  ;;  %1304 = vmatpush.bf16.xpose.msra.mxu1 %v1251_v37  ;;  %v3978_v22 = vpop.xlane.xlu2 %1523  ;;  %v1248_v16 = vpack.c.bf16 %v2429_v53, %v2431_v32  ;;  %v3986_v37 = vor.u32 %v2237_v10, %v2218_v44  ;;  %2442 = vpow2.f32 %v1198_v42  ;;  %v1190_v32 = vmul.f32 1.442695, %v1077_v46 }
 0x37d   : > { %4608 = vst [vmem:[#allocation46_spill] sm:$0xff] %v3978_v22  ;;  %v2433_v58 = vpop.eup %2432  ;;  %v1188_v22 = vmul.f32 1.442695, %v1076_v59 }
 0x37e   : > { %v2435_v28 = vpop.eup %2434  ;;  %1270 = vmatmul.bf16.vlgmr.msrb.gmra.mxu0 %v3986_v37 }
 0x37f   : > { %v1249_v53 = vpack.c.bf16 %v2433_v58, %v2435_v28  ;;  %v2437_v1 = vpop.eup %2436  ;;  %2444 = vpow2.f32 %v1188_v22 }
 0x380   : > { %v2439_v0 = vpop.eup %2438  ;;  %2446 = vpow2.f32 %v1192_v55 }
 0x381   : > { %v2441_v25 = vpop.eup %2440  ;;  %v1246_v44 = vpack.c.bf16 %v2437_v1, %v2439_v0  ;;  %2448 = vpow2.f32 %v1190_v32 }
 0x382   : > { %1291 = vmatpush.bf16.xpose.msra.mxu0 %v1248_v16  ;;  %v2443_v45 = vpop.eup %2442  ;;  %2450 = vpow2.f32 %v1194_v15 }
 0x383   : > { %v1247_v58 = vpack.c.bf16 %v2441_v25, %v2443_v45  ;;  %v4613_v45 = vpack.c.bf16 %v3826_v21, %v3820_v6  ;;  %v4616_v6 = vpack.c.bf16 %v3790_v18, %v3780_v47  ;;  %v4617_v21 = vld [vmem:[#allocation103_spill] sm:$0xff]  ;;  %v4622_v47 = vpack.c.bf16 %v3758_v31, %v3740_v2 }
 0x384   : > { %v3993_v38 = vpop.xlane.xlu1 %1460  ;;  %1305 = vmatpush.bf16.xpose.msra.mxu1 %v1249_v53  ;;  %v3996_v59 = vpop.xlane.xlu2 %1457  ;;  %v1551_v2 = vsub.f32 %v3515_v57, %v3976_v62  ;;  %v4625_v31 = vpack.c.bf16 %v3651_v14, %v3643_v51 }
 0x385   : > { %v2445_v42 = vpop.eup %2444  ;;  %v1546_v51 = vsub.f32 %v3553_v20, %v3993_v38  ;;  %v1547_v20 = vsub.f32 %v3557_v52, %v3993_v38 }
 0x386   : > { %v2447_v10 = vpop.eup %2446  ;;  %v1638_v57 = vmul.f32 1.442695, %v1551_v2  ;;  %v4629_v2 = vld [vmem:[#allocation35_spill] sm:$0xff] }
 0x387   : > { %v2449_v28 = vpop.eup %2448  ;;  %v1244_v15 = vpack.c.bf16 %v2447_v10, %v2445_v42  ;;  %v4614_v10 = vpack.c.bf16 %v3832_v50, %v3822_v19  ;;  %v4619_v19 = vpack.c.bf16 %v3746_v24, %v3736_v36  ;;  %v1550_v36 = vsub.f32 %v3511_v56, %v3976_v62  ;;  %v4626_v56 = vld [vmem:[#allocation106_spill] sm:$0xff] }
 0x388   : > { %v2451_v55 = vpop.eup %2450 }
 0x389   : > { %v1245_v0 = vpack.c.bf16 %v2451_v55, %v2449_v28 }
 0x38a   : > { %1292 = vmatpush.bf16.xpose.msra.mxu0 %v1246_v44 }
 0x38c   : > { %v1521_v16 = vpop.xlane.xlu1 %1520  ;;  %1306 = vmatpush.bf16.xpose.msra.mxu1 %v1247_v58  ;;  %v1518_v39 = vpop.xlane.xlu2 %1517 }
 0x38d   : > { %v1586_v46 = vsub.f32 %v3589_v7, %v1521_v16  ;;  %v1587_v49 = vsub.f32 %v3593_v5, %v1521_v16  ;;  %v1584_v22 = vsub.f32 %v3579_v4, %v1518_v39  ;;  %v1585_v35 = vsub.f32 %v3583_v13, %v1518_v39 }
 0x38e   : > { %v4615_v39 = vpack.c.bf16 %v3784_v41, %v3778_v40  ;;  %v4620_v40 = vld [vmem:[#allocation104_spill] sm:$0xff] }
 0x38f   : > { %v1708_v23 = vmul.f32 1.442695, %v1586_v46  ;;  %v1704_v53 = vmul.f32 1.442695, %v1584_v22  ;;  %v1706_v1 = vmul.f32 1.442695, %v1585_v35  ;;  %v1554_v22 = vsub.f32 %v4617_v21, %v3963_v34 }
 0x390   : > { %v1710_v32 = vmul.f32 1.442695, %v1587_v49  ;;  %v4618_v35 = vld [vmem:[#allocation99_spill] sm:$0xff]  ;;  %v1555_v41 = vsub.f32 %v4620_v40, %v3963_v34  ;;  %v4623_v34 = vld [vmem:[#allocation105_spill] sm:$0xff]  ;;  %v1630_v40 = vmul.f32 1.442695, %v1547_v20 }
 0x391   : > { %2452 = vpow2.f32 %v1708_v23  ;;  %v1552_v28 = vsub.f32 %v4618_v35, %v3955_v60  ;;  %v1644_v50 = vmul.f32 1.442695, %v1554_v22  ;;  %v4621_v23 = vld [vmem:[#allocation100_spill] sm:$0xff]  ;;  %v1628_v22 = vmul.f32 1.442695, %v1546_v51 }
 0x392   : > { %2454 = vpow2.f32 %v1704_v53  ;;  %1293 = vmatpush.bf16.xpose.msra.mxu0 %v1244_v15  ;;  %v1553_v55 = vsub.f32 %v4621_v23, %v3955_v60  ;;  %v1548_v15 = vsub.f32 %v4623_v34, %v3965_v63  ;;  %v4624_v60 = vpack.c.bf16 %v3699_v48, %v3691_v33 }
 0x393   : > { %2456 = vpow2.f32 %v1706_v1  ;;  %v1640_v53 = vmul.f32 1.442695, %v1552_v28  ;;  %v1646_v1 = vmul.f32 1.442695, %v1555_v41  ;;  %v4628_v48 = vpack.c.bf16 %v3663_v29, %v3645_v17 }
 0x394   : > { %2458 = vpow2.f32 %v1710_v32  ;;  %v4002_v7 = vpop.xlane.xlu1 %1454  ;;  %1307 = vmatpush.bf16.xpose.msra.mxu1 %v1245_v0  ;;  %v4017_v58 = vpop.xlane.xlu2 %1451  ;;  %v1642_v24 = vmul.f32 1.442695, %v1553_v55  ;;  %v1636_v0 = vmul.f32 1.442695, %v1550_v36  ;;  %v1632_v33 = vmul.f32 1.442695, %v1548_v15 }
 0x395   : > { %2460 = vpow2.f32 %v1644_v50  ;;  %v1545_v17 = vsub.f32 %v3547_v9, %v3996_v59  ;;  %v1542_v9 = vsub.f32 %v3627_v30, %v4002_v7  ;;  %v1540_v52 = vsub.f32 %v3615_v26, %v4017_v58 }
 0x396   : > { %2462 = vpow2.f32 %v1640_v53  ;;  %v1541_v23 = vsub.f32 %v3621_v27, %v4017_v58 }
 0x397   : > { %v4004_v5 = vpop.eup %2452  ;;  %2464 = vpow2.f32 %v1646_v1  ;;  %v1620_v53 = vmul.f32 1.442695, %v1542_v9  ;;  %v1616_v30 = vmul.f32 1.442695, %v1540_v52  ;;  %v4636_v52 = vld [vmem:[#allocation107_spill] sm:$0xff] }
 0x398   : > { %v4006_v4 = vpop.eup %2454  ;;  %2466 = vpow2.f32 %v1642_v24  ;;  %v1618_v26 = vmul.f32 1.442695, %v1541_v23 }
 0x399   : > { %v4008_v13 = vpop.eup %2456  ;;  %v1748_v25 = vpack.c.bf16 %v4004_v5, %v4006_v4  ;;  %2468 = vpow2.f32 %v1636_v0  ;;  %v4630_v0 = vld [vmem:[#allocation84_spill] sm:$0xff] }
 0x39a   : > { %v4012_v44 = vpop.eup %2458  ;;  %1294 = vmatpush.bf16.xpose.msra.mxu0 %v4613_v45  ;;  %v1549_v45 = vsub.f32 %v4626_v56, %v3965_v63  ;;  %v1544_v63 = vsub.f32 %v3543_v8, %v3996_v59  ;;  %2470 = vpow2.f32 %v1632_v33 }
 0x39b   : > { %v1749_v42 = vpack.c.bf16 %v4012_v44, %v4008_v13  ;;  %2472 = vpow2.f32 %v1638_v57 }
 0x39c   : > { %v4021_v16 = vpop.xlane.xlu1 %1514  ;;  %1308 = vmatpush.bf16.xpose.msra.mxu1 %v4614_v10  ;;  %v4031_v49 = vpop.xlane.xlu2 %1511  ;;  %v4627_v10 = vpack.c.bf16 %v3707_v61, %v3693_v3  ;;  %v1634_v3 = vmul.f32 1.442695, %v1549_v45  ;;  %v1624_v35 = vmul.f32 1.442695, %v1544_v63 }
 0x39e   : > { %2474 = vpow2.f32 %v1634_v3  ;;  %v4632_v3 = vld [vmem:[#allocation63_spill] sm:$0xff] }
 0x39f   : > { %2476 = vpow2.f32 %v1628_v22 }
 0x3a0   : > { %2478 = vpow2.f32 %v1624_v35 }
 0x3a2   : > { %1295 = vmatpush.bf16.xpose.msra.mxu0 %v4615_v39  ;;  %v2461_v39 = vpop.eup %2460 }
 0x3a3   : > { %v2463_v62 = vpop.eup %2462 }
 0x3a4   : > { %v4029_v46 = vpop.xlane.xlu1 %1448  ;;  %1309 = vmatpush.bf16.xpose.msra.mxu1 %v4616_v6  ;;  %v4052_v32 = vpop.xlane.xlu2 %1445  ;;  %v1732_v21 = vpack.c.bf16 %v2461_v39, %v2463_v62 }
 0x3a5   : > { %v2465_v6 = vpop.eup %2464  ;;  %v1536_v58 = vsub.f32 %v3703_v12, %v4052_v32  ;;  %v1539_v56 = vsub.f32 %v4630_v0, %v4029_v46  ;;  %v4642_v0 = vld [vmem:[#allocation68_spill] sm:$0xff] }
 0x3a6   : > { %v2467_v29 = vpop.eup %2466 }
 0x3a7   : > { %v1733_v8 = vpack.c.bf16 %v2465_v6, %v2467_v29  ;;  %v2469_v28 = vpop.eup %2468  ;;  %v1614_v51 = vmul.f32 1.442695, %v1539_v56 }
 0x3a8   : > { %v2471_v59 = vpop.eup %2470 }
 0x3a9   : > { %v2473_v38 = vpop.eup %2472  ;;  %v1730_v50 = vpack.c.bf16 %v2469_v28, %v2471_v59  ;;  %v4635_v59 = vld [vmem:[#allocation46_spill] sm:$0xff] }
 0x3aa   : > { %1296 = vmatpush.bf16.xpose.msra.mxu0 %v4619_v19  ;;  %v1626_v19 = vmul.f32 1.442695, %v1545_v17  ;;  %v2475_v55 = vpop.eup %2474  ;;  %v4633_v17 = vld [vmem:[#allocation27_spill] sm:$0xff] }
 0x3ab   : > { %v1731_v36 = vpack.c.bf16 %v2473_v38, %v2475_v55  ;;  %v2477_v24 = vpop.eup %2476  ;;  %v1588_v38 = vsub.f32 %v4636_v52, %v4635_v59  ;;  %v4646_v52 = vld [vmem:[#allocation96_spill] sm:$0xff] }
 0x3ac   : > { %1310 = vmatpush.bf16.xpose.msra.mxu1 %v4622_v47  ;;  %v4050_v18 = vpop.xlane.xlu1 %1526  ;;  %v4080_v61 = vpop.xlane.xlu2 %1505  ;;  %2480 = vpow2.f32 %v1626_v19  ;;  %v1543_v47 = vsub.f32 %v3631_v11, %v4002_v7 }
 0x3ad   : > { %2482 = vpow2.f32 %v1630_v40  ;;  %v2479_v34 = vpop.eup %2478 }
 0x3ae   : > { %2484 = vpow2.f32 %v1620_v53  ;;  %v1622_v15 = vmul.f32 1.442695, %v1543_v47  ;;  %v1728_v7 = vpack.c.bf16 %v2477_v24, %v2479_v34  ;;  %v4637_v47 = vld [vmem:[#allocation69_spill] sm:$0xff] }
 0x3af   : > { %2486 = vpow2.f32 %v1616_v30  ;;  %v4638_v30 = vld [vmem:[#allocation90_spill] sm:$0xff] }
 0x3b0   : > { %2488 = vpow2.f32 %v1618_v26 }
 0x3b1   : > { %2490 = vpow2.f32 %v1622_v15  ;;  %v1712_v15 = vmul.f32 1.442695, %v1588_v38  ;;  %v1581_v38 = vsub.f32 %v4646_v52, %v4031_v49  ;;  %v1491_v52 = vpop.xlane.xlu0 %1490 }
 0x3b2   : > { %1297 = vmatpush.bf16.xpose.msra.mxu0 %v4624_v60  ;;  %v1538_v60 = vsub.f32 %v3722_v54, %v4029_v46  ;;  %v2481_v27 = vpop.eup %2480  ;;  %v1608_v54 = vmul.f32 1.442695, %v1536_v58  ;;  %v4641_v58 = vld [vmem:[#allocation60_spill] sm:$0xff] }
 0x3b3   : > { %v2483_v11 = vpop.eup %2482 }
 0x3b4   : > { %1311 = vmatpush.bf16.xpose.msra.mxu1 %v4627_v10  ;;  %v4076_v14 = vpop.xlane.xlu1 %1508  ;;  %v1440_v1 = vpop.xlane.xlu2 %1439  ;;  %v1612_v45 = vmul.f32 1.442695, %v1538_v60  ;;  %v1729_v39 = vpack.c.bf16 %v2483_v11, %v2481_v27  ;;  %v4640_v60 = vld [vmem:[#allocation36_spill] sm:$0xff]  ;;  %v1591_v11 = vsub.f32 %v4641_v58, %v4050_v18 }
 0x3b5   : > { %v2485_v33 = vpop.eup %2484  ;;  %v4651_v58 = vld [vmem:[#allocation88_spill] sm:$0xff] }
 0x3b6   : > { %v2487_v12 = vpop.eup %2486  ;;  %2492 = vpow2.f32 %v1612_v45 }
 0x3b7   : > { %v2489_v62 = vpop.eup %2488  ;;  %2494 = vpow2.f32 %v1608_v54  ;;  %v1726_v46 = vpack.c.bf16 %v2485_v33, %v2487_v12  ;;  %v4643_v54 = vld [vmem:[#allocation108_spill] sm:$0xff] }
 0x3b8   : > { %v2491_v6 = vpop.eup %2490 }
 0x3b9   : > { %1298 = vmatmul.bf16.vlgmr.msra.gmra.mxu0 %v3986_v37  ;;  %v1727_v22 = vpack.c.bf16 %v2491_v6, %v2489_v62 }
 0x3ba   : > { %1752 = vmatpush.bf16.xpose.msrb.mxu0 %v4625_v31  ;;  %v1537_v31 = vsub.f32 %v4629_v2, %v4052_v32  ;;  %v4631_v32 = vld [vmem:[#allocation34_spill] sm:$0xff] }
 0x3bb   : > { %1312 = vmatmul.bf16.vlgmr.msra.gmra.mxu1 %v3990_v43 }
 0x3bc   : > { %1766 = vmatpush.bf16.xpose.msrb.mxu1 %v4628_v48  ;;  %v1443_v41 = vpop.xlane.xlu1 %1442  ;;  %v4106_v48 = vpop.xlane.xlu2 %1499  ;;  %v1610_v57 = vmul.f32 1.442695, %v1537_v31 }
 0x3bd   : > { %v1534_v63 = vsub.f32 %v4631_v32, %v1443_v41  ;;  %v1535_v29 = vsub.f32 %v4633_v17, %v1443_v41  ;;  %v2493_v35 = vpop.eup %2492 }
 0x3be   : > { %2496 = vpow2.f32 %v1610_v57  ;;  %v2495_v40 = vpop.eup %2494 }
 0x3bf   : > { %2498 = vpow2.f32 %v1614_v51  ;;  %v1604_v20 = vmul.f32 1.442695, %v1534_v63  ;;  %v1724_v34 = vpack.c.bf16 %v2493_v35, %v2495_v40  ;;  %v1718_v51 = vmul.f32 1.442695, %v1591_v11 }
 0x3c0   : > { %v1577_v11 = vsub.f32 %v4651_v58, %v4080_v61 }
 0x3c1   : > { %2500 = vpow2.f32 %v1604_v20  ;;  %v4644_v20 = vld [vmem:[#allocation31_spill] sm:$0xff] }
 0x3c2   : > { %1753 = vmatpush.bf16.xpose.msrb.mxu0 %v1732_v21  ;;  %v1532_v21 = vsub.f32 %v4632_v3, %v1440_v1 }
 0x3c4   : > { %1767 = vmatpush.bf16.xpose.msrb.mxu1 %v1733_v8  ;;  %v4104_v10 = vpop.xlane.xlu1 %1502  ;;  %v4634_v8 = vld [vmem:[#allocation33_spill] sm:$0xff]  ;;  %v1600_v9 = vmul.f32 1.442695, %v1532_v21  ;;  %v1434_v23 = vpop.xlane.xlu2 %1433 }
 0x3c5   : > { %v1533_v28 = vsub.f32 %v4634_v8, %v1440_v1  ;;  %v2497_v55 = vpop.eup %2496  ;;  %v4639_v1 = vld [vmem:[#allocation67_spill] sm:$0xff]  ;;  %v1529_v56 = vsub.f32 %v4642_v0, %v1434_v23  ;;  %v4645_v8 = vld [vmem:[#allocation57_spill] sm:$0xff] }
 0x3c6   : > { %v2499_v41 = vpop.eup %2498  ;;  %2502 = vpow2.f32 %v1600_v9  ;;  %v1528_v26 = vsub.f32 %v4639_v1, %v1434_v23  ;;  %v4647_v23 = vld [vmem:[#allocation32_spill] sm:$0xff] }
 0x3c7   : > { %v1602_v24 = vmul.f32 1.442695, %v1533_v28  ;;  %v1725_v2 = vpack.c.bf16 %v2499_v41, %v2497_v55  ;;  %v2501_v45 = vpop.eup %2500  ;;  %v1580_v28 = vsub.f32 %v4645_v8, %v4031_v49  ;;  %v1583_v55 = vsub.f32 %v4647_v23, %v4021_v16  ;;  %v4649_v49 = vld [vmem:[#allocation85_spill] sm:$0xff] }
 0x3c8   : > { %v1592_v33 = vmul.f32 1.442695, %v1528_v26  ;;  %v4650_v26 = vld [vmem:[#allocation62_spill] sm:$0xff]  ;;  %v4661_v23 = vld [vmem:[#allocation101_spill] sm:$0xff] }
 0x3c9   : > { %v1696_v41 = vmul.f32 1.442695, %v1580_v28  ;;  %v4659_v28 = vld [vmem:[#allocation40_spill] sm:$0xff] }
 0x3ca   : > { %1754 = vmatpush.bf16.xpose.msrb.mxu0 %v1730_v50  ;;  %v1606_v50 = vmul.f32 1.442695, %v1535_v29 }
 0x3cc   : > { %1768 = vmatpush.bf16.xpose.msrb.mxu1 %v1731_v36  ;;  %v1437_v19 = vpop.xlane.xlu1 %1436  ;;  %v1590_v36 = vsub.f32 %v4638_v30, %v4050_v18  ;;  %2504 = vpow2.f32 %v1606_v50  ;;  %v2503_v57 = vpop.eup %2502  ;;  %v1594_v18 = vmul.f32 1.442695, %v1529_v56 }
 0x3cd   : > { %v1530_v53 = vsub.f32 %v4637_v47, %v1437_v19  ;;  %v1531_v27 = vsub.f32 %v4640_v60, %v1437_v19  ;;  %2506 = vpow2.f32 %v1602_v24  ;;  %v1722_v32 = vpack.c.bf16 %v2501_v45, %v2503_v57  ;;  %v1494_v56 = vpop.xlane.xlu2 %1493 }
 0x3ce   : > { %v1716_v31 = vmul.f32 1.442695, %v1590_v36  ;;  %2508 = vpow2.f32 %v1712_v15  ;;  %v1698_v36 = vmul.f32 1.442695, %v1581_v38  ;;  %v1702_v24 = vmul.f32 1.442695, %v1583_v55 }
 0x3cf   : > { %v1598_v12 = vmul.f32 1.442695, %v1531_v27  ;;  %v1579_v15 = vsub.f32 %v4650_v26, %v4076_v14 }
 0x3d2   : > { %1755 = vmatpush.bf16.xpose.msrb.mxu0 %v1728_v7  ;;  %v1596_v7 = vmul.f32 1.442695, %v1530_v53  ;;  %v2505_v62 = vpop.eup %2504 }
 0x3d3   : > { %v2507_v6 = vpop.eup %2506 }
 0x3d4   : > { %1769 = vmatpush.bf16.xpose.msrb.mxu1 %v1729_v39  ;;  %v1589_v39 = vsub.f32 %v4643_v54, %v4635_v59  ;;  %2510 = vpow2.f32 %v1596_v7  ;;  %v2509_v3 = vpop.eup %2508  ;;  %v4653_v54 = vld [vmem:[#allocation28_spill] sm:$0xff]  ;;  %v1497_v57 = vpop.xlane.xlu1 %1496 }
 0x3d5   : > { %2512 = vpow2.f32 %v1716_v31  ;;  %v1694_v31 = vmul.f32 1.442695, %v1579_v15 }
 0x3d6   : > { %v1714_v63 = vmul.f32 1.442695, %v1589_v39  ;;  %2514 = vpow2.f32 %v1592_v33  ;;  %v4654_v39 = vld [vmem:[#allocation66_spill] sm:$0xff] }
 0x3d7   : > { %2516 = vpow2.f32 %v1598_v12  ;;  %v1575_v33 = vsub.f32 %v4654_v39, %v4104_v10 }
 0x3d8   : > { %2518 = vpow2.f32 %v1718_v51 }
 0x3d9   : > { %2520 = vpow2.f32 %v1594_v18  ;;  %v1686_v18 = vmul.f32 1.442695, %v1575_v33  ;;  %v4669_v33 = vld [vmem:[#allocation74_spill] sm:$0xff] }
 0x3da   : > { %1756 = vmatpush.bf16.xpose.msrb.mxu0 %v1726_v46  ;;  %v1723_v46 = vpack.c.bf16 %v2505_v62, %v2507_v6  ;;  %v2511_v21 = vpop.eup %2510  ;;  %2522 = vpow2.f32 %v1714_v63  ;;  %v4656_v63 = vld [vmem:[#allocation76_spill] sm:$0xff] }
 0x3db   : > { %v2513_v17 = vpop.eup %2512  ;;  %v1570_v6 = vsub.f32 %v4656_v63, %v1497_v57 }
 0x3dc   : > { %1770 = vmatpush.bf16.xpose.msrb.mxu1 %v1727_v22  ;;  %v2515_v29 = vpop.eup %2514  ;;  %v1582_v22 = vsub.f32 %v4644_v20, %v4021_v16  ;;  %v1750_v9 = vpack.c.bf16 %v2513_v17, %v2509_v3  ;;  %v1576_v16 = vsub.f32 %v4649_v49, %v4080_v61  ;;  %v1572_v61 = vsub.f32 %v4653_v54, %v4106_v48  ;;  %v1488_v20 = vpop.xlane.xlu2 %1487  ;;  %v4668_v54 = vld [vmem:[#allocation45_spill] sm:$0xff] }
 0x3dd   : > { %v2517_v35 = vpop.eup %2516  ;;  %v1720_v19 = vpack.c.bf16 %v2511_v21, %v2515_v29  ;;  %v1564_v55 = vsub.f32 %v4661_v23, %v1488_v20  ;;  %v1482_v26 = vpop.xlane.xlu1 %1481 }
 0x3de   : > { %v2519_v40 = vpop.eup %2518  ;;  %v1700_v47 = vmul.f32 1.442695, %v1582_v22  ;;  %v1680_v62 = vmul.f32 1.442695, %v1572_v61  ;;  %v4658_v22 = vld [vmem:[#allocation77_spill] sm:$0xff] }
 0x3df   : > { %v2521_v59 = vpop.eup %2520 }
 0x3e0   : > { %v2523_v50 = vpop.eup %2522  ;;  %v1721_v53 = vpack.c.bf16 %v2517_v35, %v2521_v59  ;;  %2524 = vpow2.f32 %v1700_v47  ;;  %v1676_v35 = vmul.f32 1.442695, %v1570_v6  ;;  %v1851_v59 = vld [vmem:[%s4660_s26] sm:$0xf]  ;;  %s2686_s26 = scalar_lea.hbm %s2685_s27, 8 }
 0x3e1   : > { %v1751_v30 = vpack.c.bf16 %v2519_v40, %v2523_v50  ;;  %2526 = vpow2.f32 %v1696_v41  ;;  %1904 = vxpose.xlu1.c.b16.start.end [1/1] (short) (narrow) %v1851_v59, 16  ;;  %v1852_v47 = vld [vmem:[%s4662_s30] sm:$0xf]  ;;  %p2687_p5 = scmp.ne.s32.totalorder %s2685_s27, %s2686_s26  ;;  %p2692_p10 = scmp.lt.s32.totalorder %s2690_s29, %s2686_s26 }
 0x3e2   : > { %1757 = vmatpush.bf16.xpose.msrb.mxu0 %v1724_v34  ;;  %v4648_v34 = vld [vmem:[#allocation61_spill] sm:$0xff]  ;;  %2528 = vpow2.f32 %v1698_v36  ;;  %1853 = vxpose.xlu0.c.b16.start.end [1/1] (short) (narrow) %v1852_v47, 16 }
 0x3e3   : > { %v1578_v1 = vsub.f32 %v4648_v34, %v4076_v14  ;;  %2530 = vpow2.f32 %v1702_v24  ;;  %v4652_v14 = vld [vmem:[#allocation30_spill] sm:$0xff]  ;;  %v4663_v36 = vld [vmem:[#allocation53_spill] sm:$0xff]  ;;  %p2688_p6 = pnand %p2687_p5, %p2871_p9  ;;  %p2693_p13 = por %p2692_p10, %p2691_p8 }
 0x3e4   : > { %1771 = vmatpush.bf16.xpose.msrb.mxu1 %v1725_v2  ;;  %v1688_v2 = vmul.f32 1.442695, %v1576_v16  ;;  %v1574_v5 = vsub.f32 %v4652_v14, %v4104_v10  ;;  %v4657_v10 = vld [vmem:[#allocation39_spill] sm:$0xff]  ;;  %v1566_v24 = vsub.f32 %v4663_v36, %v1491_v52  ;;  %v1664_v16 = vmul.f32 1.442695, %v1564_v55  ;;  %v1485_v58 = vpop.xlane.xlu2 %1484 }
 0x3e5   : > { %v1692_v60 = vmul.f32 1.442695, %v1578_v1  ;;  %v1568_v17 = vsub.f32 %v4657_v10, %v1494_v56  ;;  %v4664_v1 = vld [vmem:[#allocation72_spill] sm:$0xff]  ;;  %v1563_v61 = vsub.f32 %v4668_v54, %v1485_v58  ;;  %p2689_p7 = pneg %p2688_p6 }
 0x3e6   : > { %v2525_v27 = vpop.eup %2524  ;;  %v1684_v13 = vmul.f32 1.442695, %v1574_v5  ;;  %v1565_v49 = vsub.f32 %v4664_v1, %v1488_v20  ;;  %v4667_v5 = vld [vmem:[#allocation75_spill] sm:$0xff] }
 0x3e7   : > { %v2527_v7 = vpop.eup %2526  ;;  %2532 = vpow2.f32 %v1692_v60  ;;  %v4665_v60 = vld [vmem:[#allocation54_spill] sm:$0xff]  ;;  %p2694_p0 = pnand %p2693_p13, %p2689_p7 }
 0x3e8   : > { %v2529_v0 = vpop.eup %2528  ;;  %v1746_v45 = vpack.c.bf16 %v2525_v27, %v2527_v7  ;;  %2534 = vpow2.f32 %v1688_v2  ;;  %v1567_v27 = vsub.f32 %v4665_v60, %v1491_v52  ;;  %v1668_v7 = vmul.f32 1.442695, %v1566_v24 }
 0x3e9   : > { %v2531_v4 = vpop.eup %2530  ;;  %2536 = vpow2.f32 %v1694_v31  ;;  %v1666_v2 = vmul.f32 1.442695, %v1565_v49  ;;  %v4666_v31 = vld [vmem:[#allocation73_spill] sm:$0xff] }
 0x3ea   : > { %1758 = vmatpush.bf16.xpose.msrb.mxu0 %v1722_v32  ;;  %v1747_v44 = vpack.c.bf16 %v2531_v4, %v2529_v0  ;;  %v1560_v0 = vsub.f32 %v4666_v31, %v1482_v26  ;;  %v1562_v4 = vsub.f32 %v4667_v5, %v1485_v58  ;;  %v4186_v58 = vld [vmem:[%s533_s10] sm:$0x3] }
 0x3ec   : > { %1772 = vmatpush.bf16.xpose.msrb.mxu1 %v1723_v46 }
 0x3ed   : > { %v2533_v51 = vpop.eup %2532 }
 0x3ee   : > { %v2535_v32 = vpop.eup %2534 }
 0x3ef   : > { %v2537_v46 = vpop.eup %2536  ;;  %v1744_v21 = vpack.c.bf16 %v2533_v51, %v2535_v32  ;;  %v1662_v51 = vmul.f32 1.442695, %v1563_v61 }
 0x3f2   : > { %1759 = vmatpush.bf16.xpose.msrb.mxu0 %v1720_v19  ;;  %v1569_v19 = vsub.f32 %v4659_v28, %v1494_v56  ;;  %v1670_v56 = vmul.f32 1.442695, %v1567_v27 }
 0x3f4   : > { %1773 = vmatpush.bf16.xpose.msrb.mxu1 %v1721_v53  ;;  %v1674_v41 = vmul.f32 1.442695, %v1569_v19 }
 0x3f9   : > { %1760 = vmatmul.bf16.vlgmr.msrb.gmra.mxu0 %v3986_v37 }
 0x3fa   : > { %1780 = vmatpush.bf16.xpose.msra.mxu0 %v1750_v9  ;;  %v1672_v9 = vmul.f32 1.442695, %v1568_v17 }
 0x3fb   : > { %1774 = vmatmul.bf16.vlgmr.msrb.gmra.mxu1 %v3990_v43  ;;  %v1271_v20 = vpop.f32.mrf.mxu0 }
 0x3fc   : > { %1794 = vmatpush.bf16.xpose.msra.mxu1 %v1751_v30 }
 0x402   : > { %1781 = vmatpush.bf16.xpose.msra.mxu0 %v1748_v25  ;;  %v1690_v25 = vmul.f32 1.442695, %v1577_v11 }
 0x404   : > { %1795 = vmatpush.bf16.xpose.msra.mxu1 %v1749_v42  ;;  %2538 = vpow2.f32 %v1690_v25  ;;  %v4655_v42 = vld [vmem:[#allocation29_spill] sm:$0xff] }
 0x405   : > { %v1573_v12 = vsub.f32 %v4655_v42, %v4106_v48  ;;  %2540 = vpow2.f32 %v1684_v13  ;;  %v1571_v48 = vsub.f32 %v4658_v22, %v1497_v57  ;;  %v1561_v13 = vsub.f32 %v4669_v33, %v1482_v26 }
 0x406   : > { %2542 = vpow2.f32 %v1680_v62  ;;  %v1660_v42 = vmul.f32 1.442695, %v1562_v4 }
 0x407   : > { %v1682_v3 = vmul.f32 1.442695, %v1573_v12  ;;  %2544 = vpow2.f32 %v1686_v18  ;;  %v1678_v38 = vmul.f32 1.442695, %v1571_v48  ;;  %v1658_v62 = vmul.f32 1.442695, %v1561_v13  ;;  %v1285_v48 = vpop.f32.mrf.mxu1 }
 0x409   : > { %2546 = vpow2.f32 %v1682_v3 }
 0x40a   : > { %1782 = vmatpush.bf16.xpose.msra.mxu0 %v1746_v45  ;;  %v2539_v29 = vpop.eup %2538  ;;  %2548 = vpow2.f32 %v1676_v35  ;;  %v1273_v35 = vpop.f32.mrf.mxu0 }
 0x40b   : > { %v1745_v8 = vpack.c.bf16 %v2537_v46, %v2539_v29  ;;  %v2541_v40 = vpop.eup %2540  ;;  %2550 = vpow2.f32 %v1672_v9 }
 0x40c   : > { %1796 = vmatpush.bf16.xpose.msra.mxu1 %v1747_v44  ;;  %v2543_v50 = vpop.eup %2542  ;;  %2552 = vpow2.f32 %v1678_v38  ;;  %v1656_v44 = vmul.f32 1.442695, %v1560_v0 }
 0x40d   : > { %v2545_v53 = vpop.eup %2544  ;;  %v1742_v30 = vpack.c.bf16 %v2541_v40, %v2543_v50  ;;  %2554 = vpow2.f32 %v1674_v41 }
 0x40e   : > { %2556 = vpow2.f32 %v1664_v16 }
 0x40f   : > { %v2547_v34 = vpop.eup %2546  ;;  %2558 = vpow2.f32 %v1668_v7 }
 0x410   : > { %v1743_v15 = vpack.c.bf16 %v2545_v53, %v2547_v34  ;;  %v2549_v11 = vpop.eup %2548  ;;  %2560 = vpow2.f32 %v1666_v2 }
 0x411   : > { %v2551_v14 = vpop.eup %2550  ;;  %2562 = vpow2.f32 %v1670_v56 }
 0x412   : > { %1783 = vmatpush.bf16.xpose.msra.mxu0 %v1744_v21  ;;  %v2553_v25 = vpop.eup %2552  ;;  %v1740_v45 = vpack.c.bf16 %v2549_v11, %v2551_v14  ;;  %2564 = vpow2.f32 %v1656_v44  ;;  %v1286_v14 = vadd.f32 %v1285_v48, %v1271_v20 }
 0x413   : > { %v2555_v39 = vpop.eup %2554  ;;  %2566 = vpow2.f32 %v1660_v42 }
 0x414   : > { %1797 = vmatpush.bf16.xpose.msra.mxu1 %v1745_v8  ;;  %v1741_v12 = vpack.c.bf16 %v2553_v25, %v2555_v39  ;;  %v2557_v57 = vpop.eup %2556  ;;  %2568 = vpow2.f32 %v1662_v51  ;;  %v1287_v8 = vpop.f32.mrf.mxu1 }
 0x415   : > { %v2559_v18 = vpop.eup %2558  ;;  %2570 = vpow2.f32 %v1658_v62  ;;  %v1288_v28 = vadd.f32 %v1287_v8, %v1273_v35 }
 0x416   : > { %v2561_v32 = vpop.eup %2560  ;;  %v1738_v63 = vpack.c.bf16 %v2559_v18, %v2557_v57 }
 0x417   : > { %v2563_v6 = vpop.eup %2562  ;;  %2572 = vrcp.f32 %v1288_v28  ;;  %vm1323_vm4 = vweird.f32 %v1288_v28  ;;  %v1327_v34 = vand.u32 2147483647, %v1288_v28 }
 0x418   : > { %v1739_v46 = vpack.c.bf16 %v2563_v6, %v2561_v32  ;;  %v2565_v3 = vpop.eup %2564 }
 0x419   : > { %v2567_v21 = vpop.eup %2566  ;;  %vm1328_vm11 = vcmp.eq.f32.partialorder %v1327_v34, 8.507059e+37 }
 0x41a   : > { %1784 = vmatpush.bf16.xpose.msra.mxu0 %v1742_v30  ;;  %v2569_v10 = vpop.eup %2568  ;;  %v1736_v29 = vpack.c.bf16 %v2567_v21, %v2565_v3  ;;  %v1329_v30 = vand.u32 2147483648, %v1288_v28  ;;  %v1955_v3 = vld [vmem:[%s4673_s19] sm:$0xf]  ;;  %v2760_v21 = vmov 0  }
 0x41b   : > { %v2571_v17 = vpop.eup %2570  ;;  %2314 = vset.pattern.permute.xlu2 %v2760_v21 }
 0x41c   : > { %1798 = vmatpush.bf16.xpose.msra.mxu1 %v1743_v15  ;;  %v1737_v22 = vpack.c.bf16 %v2569_v10, %v2571_v17  ;;  %v1330_v26 = vor.u32 1.1754944e-38, %v1329_v30  ;;  %1958 = vperm.xlu2 %2314, %v1955_v3  }
 0x41d   : > { %v2573_v59 = vpop.eup %2572 }
 0x41e   : > { %v1319_v50 = vmul.f32 %v2573_v59, %v1288_v28  ;;  %vm1324_vm5 = vweird.f32 %v2573_v59 }
 0x41f   : > { %vm4176_vm8 = vmor %vm1323_vm4, %vm1324_vm5 }
 0x420   : > { %v1320_v23 = vsub.f32 1.0, %v1319_v50 }
 0x422   : > { %1785 = vmatpush.bf16.xpose.msra.mxu0 %v1740_v45  ;;  %v1321_v47 = vmul.f32 %v2573_v59, %v1320_v23  ;;  %v1362_v23 = vsub.f32 1.0, %v4186_v58 }
 0x424   : > { %1799 = vmatpush.bf16.xpose.msra.mxu1 %v1741_v12  ;;  %v1322_v36 = vadd.f32 %v2573_v59, %v1321_v47 }
 0x426   : > { %v1326_v60 = vsel %vm4176_vm8, %v2573_v59, %v1322_v36 }
 0x427   : > { %v1331_v7 = vsel %vm1328_vm11, %v1330_v26, %v1326_v60 }
 0x42a   : > { %1786 = vmatpush.bf16.xpose.msra.mxu0 %v1738_v63 }
 0x42c   : > { %1800 = vmatpush.bf16.xpose.msra.mxu1 %v1739_v46 }
 0x432   : > { %1787 = vmatpush.bf16.xpose.msra.mxu0 %v1736_v29 }
 0x434   : > { %1801 = vmatpush.bf16.xpose.msra.mxu1 %v1737_v22 }
 0x436   : > { %v1299_v19 = vpop.f32.mrf.mxu0 }
 0x438   : > { %v1313_v40 = vpop.f32.mrf.mxu1 }
 0x439   : > { %1788 = vmatmul.bf16.vlgmr.msra.gmra.mxu0 %v3986_v37  ;;  %v1314_v31 = vadd.f32 %v1313_v40, %v1299_v19 }
 0x43b   : > { %1802 = vmatmul.bf16.vlgmr.msra.gmra.mxu1 %v3990_v43 }
 0x43e   : > { %v1301_v9 = vpop.f32.mrf.mxu0 }
 0x440   : > { %v1315_v52 = vpop.f32.mrf.mxu1 }
 0x441   : > { %v1316_v38 = vadd.f32 %v1315_v52, %v1301_v9 }
 0x443   : > { %2574 = vrcp.f32 %v1316_v38  ;;  %v1343_v37 = vand.u32 2147483648, %v1316_v38  ;;  %vm1337_vm6 = vweird.f32 %v1316_v38  ;;  %v1341_v41 = vand.u32 2147483647, %v1316_v38 }
 0x445   : > { %v1344_v49 = vor.u32 1.1754944e-38, %v1343_v37  ;;  %vm1342_vm10 = vcmp.eq.f32.partialorder %v1341_v41, 8.507059e+37 }
 0x449   : > { %v2575_v55 = vpop.eup %2574  ;;  %2315 = vset.pattern.permute.xlu0 %v2760_v21 }
 0x44a   : > { %v1333_v53 = vmul.f32 %v2575_v55, %v1316_v38  ;;  %vm1338_vm7 = vweird.f32 %v2575_v55 }
 0x44b   : > { %vm1339_vm9 = vmor %vm1337_vm6, %vm1338_vm7 }
 0x44c   : > { %v1334_v43 = vsub.f32 1.0, %v1333_v53 }
 0x44e   : > { %v1335_v1 = vmul.f32 %v2575_v55, %v1334_v43 }
 0x450   : > { %v1336_v16 = vadd.f32 %v2575_v55, %v1335_v1 }
 0x452   : > { %v1340_v15 = vsel %vm1339_vm9, %v2575_v55, %v1336_v16 }
 0x453   : > { %v1345_v27 = vsel %vm1342_vm10, %v1344_v49, %v1340_v15 }
 0x454   : > { %v1348_v11 = vrot.slane %v1345_v27, 7 }
 0x456   : > { %v1350_v2 = vsel %vm1349_vm12, %v1331_v7, %v1348_v11 }
 0x457   : > { %v1352_v0 = vmul.f32 %v1350_v2, %v4186_v58 }
 0x459   : > { %v1354_v5 = vperm.slane %v1352_v0, 0  ;;  %v1355_v4 = vperm.slane %v1352_v0, 1 }
 0x45b   : > { %v1358_v25 = vmul.f32 %v1354_v5, %v1286_v14  ;;  %v1359_v56 = vmul.f32 %v1355_v4, %v1314_v31  ;;  %v1965_v4 = vld.sshfl [vmem:[#allocation1 + $0x8] sm:$0xff pattern:$0x75316420] }
 0x45d   : > { %v1360_v45 = vpack.c.bf16 %v1358_v25, %v1358_v25  ;;  %v1361_v54 = vpack.c.bf16 %v1359_v56, %v1359_v56 }
 0x45f   : > { %v1924_v61 = vsel %vm675_vm2, %v1360_v45, 0  ;;  %v1927_v39 = vsel %vm675_vm2, %v1361_v54, 0  ;;  %v1964_v45 = vld.sshfl [vmem:[#allocation1] sm:$0xff pattern:$0x75316420] }
 0x460   : > { %1936 = vmatpush.bf16.msrb.mxu0 %v1924_v61  ;;  %1949 = vmatpush.bf16.msrb.mxu1 %v1927_v39 }
 0x476   : > { %v1761_v33 = vpop.f32.mrf.mxu0  ;;  %v1959_v2 = vpop.permute.xlu2 %1958 }
 0x478   : > { %v1775_v13 = vpop.f32.mrf.mxu1 }
 0x479   : > { %v1776_v41 = vadd.f32 %v1775_v13, %v1761_v33 }
 0x47e   : > { %v1763_v44 = vpop.f32.mrf.mxu0 }
 0x480   : > { %v1777_v42 = vpop.f32.mrf.mxu1 }
 0x481   : > { %v1778_v12 = vadd.f32 %v1777_v42, %v1763_v44 }
 0x483   : > { %2576 = vrcp.f32 %v1778_v12  ;;  %vm1813_vm13 = vweird.f32 %v1778_v12  ;;  %v1819_v48 = vand.u32 2147483648, %v1778_v12  ;;  %v1817_v8 = vand.u32 2147483647, %v1778_v12 }
 0x485   : > { %v1820_v59 = vor.u32 1.1754944e-38, %v1819_v48  ;;  %vm1818_vm6 = vcmp.eq.f32.partialorder %v1817_v8, 8.507059e+37 }
 0x489   : > { %v2577_v18 = vpop.eup %2576 }
 0x48a   : > { %v1809_v46 = vmul.f32 %v2577_v18, %v1778_v12  ;;  %vm1814_vm14 = vweird.f32 %v2577_v18 }
 0x48b   : > { %vm1815_vm0 = vmor %vm1813_vm13, %vm1814_vm14 }
 0x48c   : > { %v1810_v10 = vsub.f32 1.0, %v1809_v46 }
 0x48d   : > { %v1912_v6 = vpop.trf.xlu1 }
 0x48e   : > { %2226 = vmatmul.msk.bf16.vlgmr.msrb.gmra.mxu0 %vm626_vm3, %v1912_v6  ;;  %2227 = vmatmul.msk.bf16.vlgmr.msrb.gmra.mxu1 %vm626_vm3, %v1912_v6  ;;  %v1811_v29 = vmul.f32 %v2577_v18, %v1810_v10  ;;  %v1861_v60 = vpop.trf.xlu0 }
 0x490   : > { %v1812_v40 = vadd.f32 %v2577_v18, %v1811_v29 }
 0x492   : > { %v1816_v38 = vsel %vm1815_vm0, %v2577_v18, %v1812_v40 }
 0x493   : > { %v1821_v53 = vsel %vm1818_vm6, %v1820_v59, %v1816_v38 }
 0x4b6   : > { %v1789_v57 = vpop.f32.mrf.mxu0 }
 0x4b8   : > { %v1803_v51 = vpop.f32.mrf.mxu1 }
 0x4b9   : > { %v1804_v30 = vadd.f32 %v1803_v51, %v1789_v57 }
 0x4be   : > { %v1791_v62 = vpop.f32.mrf.mxu0 }
 0x4c0   : > { %v1805_v32 = vpop.f32.mrf.mxu1 }
 0x4c1   : > { %v1806_v63 = vadd.f32 %v1805_v32, %v1791_v62 }
 0x4c3   : > { %2578 = vrcp.f32 %v1806_v63  ;;  %v1833_v35 = vand.u32 2147483648, %v1806_v63  ;;  %v1831_v19 = vand.u32 2147483647, %v1806_v63  ;;  %vm1827_vm1 = vweird.f32 %v1806_v63 }
 0x4c5   : > { %v1834_v52 = vor.u32 1.1754944e-38, %v1833_v35  ;;  %vm1832_vm5 = vcmp.eq.f32.partialorder %v1831_v19, 8.507059e+37 }
 0x4c9   : > { %v2579_v17 = vpop.eup %2578 }
 0x4ca   : > { %v1823_v20 = vmul.f32 %v2579_v17, %v1806_v63  ;;  %vm1828_vm15 = vweird.f32 %v2579_v17 }
 0x4cb   : > { %vm1829_vm4 = vmor %vm1827_vm1, %vm1828_vm15 }
 0x4cc   : > { %v1824_v22 = vsub.f32 1.0, %v1823_v20 }
 0x4ce   : > { %v1825_v28 = vmul.f32 %v2579_v17, %v1824_v22 }
 0x4d0   : > { %v1826_v9 = vadd.f32 %v2579_v17, %v1825_v28 }
 0x4d2   : > { %v1830_v50 = vsel %vm1829_vm4, %v2579_v17, %v1826_v9 }
 0x4d3   : > { %v1835_v55 = vsel %vm1832_vm5, %v1834_v52, %v1830_v50 }
 0x4d4   : > { %v1838_v47 = vrot.slane %v1835_v55, 7 }
 0x4d6   : > { %v1839_v37 = vsel %vm1349_vm12, %v1821_v53, %v1838_v47 }
 0x4d7   : > { %v1841_v43 = vmul.f32 %v1839_v37, %v1362_v23 }
 0x4d9   : > { %v1843_v36 = vperm.slane %v1841_v43, 0  ;;  %v1844_v24 = vperm.slane %v1841_v43, 1 }
 0x4db   : > { %v1847_v34 = vmul.f32 %v1843_v36, %v1776_v41  ;;  %v1848_v1 = vmul.f32 %v1844_v24, %v1804_v30 }
 0x4dd   : > { %v1849_v49 = vpack.c.bf16 %v1847_v34, %v1847_v34  ;;  %v1850_v16 = vpack.c.bf16 %v1848_v1, %v1848_v1 }
 0x4df   : > { %v1873_v26 = vsel %vm675_vm2, %v1849_v49, 0  ;;  %v1876_v15 = vsel %vm675_vm2, %v1850_v16, 0 }
 0x4e0   : > { %1885 = vmatpush.bf16.msrb.mxu2 %v1873_v26  ;;  %1898 = vmatpush.bf16.msrb.mxu3 %v1876_v15 }
 0x4e3   : > { %2224 = vmatmul.msk.bf16.vlgmr.msrb.gmra.mxu2 %vm626_vm3, %v1861_v60  ;;  %2225 = vmatmul.msk.bf16.vlgmr.msrb.gmra.mxu3 %vm626_vm3, %v1861_v60 }
 0x50b   : > { %v1938_v27 = vpop.f32.mrf.mxu0  ;;  %v1951_v58 = vpop.f32.mrf.mxu1 }
 0x513   : > { %v1940_v11 = vpop.f32.mrf.mxu0  ;;  %v1953_v7 = vpop.f32.mrf.mxu1 }
 0x566   : > { %v1887_v31 = vpop.f32.mrf.mxu2  ;;  %v1900_v0 = vpop.f32.mrf.mxu3 }
 0x567   : > { %v1939_v14 = vadd.f32 %v1938_v27, %v1887_v31  ;;  %v1952_v5 = vadd.f32 %v1951_v58, %v1900_v0 }
 0x569   : > { %v1961_v25 = vadd.f32 %v1959_v2, %v1939_v14  ;;  %v1962_v56 = vadd.f32 %v1959_v2, %v1952_v5 }
 0x56b   : > { %v1969_v54 = vadd.f32 %v1965_v4, %v1962_v56  ;;  %v1968_v61 = vadd.f32 %v1964_v45, %v1961_v25 }
 0x56d   : > { %v1972_v39 = vrot.slane %v1969_v54, 4 }
 0x56e   : > { %v1889_v33 = vpop.f32.mrf.mxu2  ;;  %v1902_v13 = vpop.f32.mrf.mxu3 }
 0x56f   : > { %v1973_v44 = vsel %vm675_vm2, %v1968_v61, %v1972_v39 }
 0x570   : > { %1975 = vst [vmem:[%s524_s28] sm:$0xff] %v1973_v44 }
 0x571   : > { %2697 = shalt.err (!%p2694_p0)
}
 0x572   : > { %2245 = dma.vmem_to_hbm [thread:$0]  (%p2871_p9), %s1993_s20, 128, %s1995_s13, %s1977_s16  }
 0x573 PF: > { %s4676_s1 = sld [smem:[#allocation12_spill]]  ;;  %p2258_p1 = pnand %p2164_p12, %p2878_p11 }
 0x574   : > { %s4678_s8 = sld [smem:[#allocation14_spill]] }
 0x575   : > { %p2259_p2 = pneg %p2258_p1 }
 0x579   : > { %s2006_s10 = sand.u32 1, %s4676_s1  }
 0x57a   : > { %s2007_s15 = scalar_lea.sflag [#allocation4], %s2006_s10 }
 0x57b   : > { %2731 = dma.done.wait (%p2259_p2), %s2007_s15, 128  }
 0x57c   : > { %2733 = vsyncadd (%p2259_p2), %s2007_s15, 4294967168  ;;  %s29_s18 = sadd.s32 1, %s4678_s8   ;;  %s4679_s19 = sld [smem:[#allocation13_spill]] }
 0x57d   : > { %p26_p3 = scmp.ge.s32.totalorder %s29_s18, 4   ;;  %s4680_s15 = sld [smem:[#allocation17_spill]] }
 0x57e   : > { %s4681_s25 = sld [smem:[#allocation15_spill]]  ;;  %s4682_s13 = smov %s2740_s14 }
 0x57f   : > { %s4684_s16 = smov %s2752_s17 }
 0x580   :  { %28 = sbr.rel (!%p26_p3) target bundleno = 15 (0xf), region = 138 }
 0x582   : > { %s4683_s14 = smov %s4679_s19 }
 0x584   : > { %s4685_s17 = smov %s4681_s25 }
 0x585   :  { %2013 = vsyncpa [#allocation3], 1 }
 0x586   :  { %2015 = vsyncpa [#allocation3 + $0x1], 1 }
 0x587   :  { %2016 = vsyncpa [#allocation6], 1 }
 0x588   :  { %2018 = vsyncpa [#allocation6 + $0x1], 1 }
 0x589   :  { %2019 = vsyncpa [#allocation4], 1 }
 0x58a   :  { %2021 = vsyncpa [#allocation4 + $0x1], 1 }

</bundles_post_ra>
